<compile_context>
chip_gen: v6e
topology: v6e:2x2x1
jax: 0.10.0
libtpu: 0.0.40
codegen_flags: <defaults>
</compile_context>

<pallas_src>
import functools
import math

import jax
import jax.numpy as jnp
from jax import lax
from jax.experimental import pallas as pl
from jax.experimental.pallas import tpu as pltpu  # noqa: F401  (kept for VMEM scratch if layers grow)

# ---- model dimensions (consistent with the module's __init__) -------------------------
D_MODEL = 32        # aug_state_item_dim
ACTION_DIM = 8      # action_dim
N_HEADS = 2         # n_attention_heads
D_HEAD = 32         # d_head_inner
D_FF = 64           # d_ff_inner
N_LAYERS = 1        # n_transformer_layers (module default; fused kernel assumes 1)
MEM_LEN = 6         # memory_shape = (6, 1, aug_state_item_dim)
SEQ_LEN = 8         # current sequence length of aug_state
GATE_BIAS = 0.1     # GRU-gating bias b_g
HEAD_H1 = 500       # dense_layer1 width in the PyTorch module
HEAD_H1_PAD = 512   # zero-padded to a multiple of 128 (identical math, lane-dense)


# ======================================================================================
# The single fused Pallas kernel
# ======================================================================================

def _actor_fused_kernel(
        # dynamic inputs
        x_ref, mem0_ref, mem1_ref, pos_ref,
        # transformer-layer params
        ln1_g, ln1_b, ln2_g, ln2_b,
        w_all, u_ref, v_ref, w_out,
        g1_wy, g1_by, g1_wx, g1_bx, g1_wg, g1_bg,
        g2_wy, g2_by, g2_wx, g2_bx, g2_wg, g2_bg,
        ff_w1, ff_b1, ff_w2, ff_b2,
        # actor-head params
        hw1, hb1, hw2, hb2, hw3, hb3, hw4, hb4,
        # outputs
        act_ref, nmem0_ref, nmem1_ref,
        *, cs, prev, n_heads, d_head, gate_bias, eps):
    D = x_ref.shape[1]
    ks = cs + prev
    hd = n_heads * d_head
    f32 = jnp.float32

    def mm(a, b):
        return jnp.dot(a, b, preferred_element_type=f32)

    def layernorm(t, g, b):
        mu = jnp.mean(t, axis=-1, keepdims=True)
        var = jnp.mean((t - mu) ** 2, axis=-1, keepdims=True)
        return (t - mu) * lax.rsqrt(var + eps) * g[...] + b[...]

    x = x_ref[...]          # (cs, D)   raw layer input
    mem = mem0_ref[...]     # (prev, D) memory for this layer
    pos = pos_ref[...]      # (ks, D)   sinusoidal relative position embeddings

    # ---------------- MultiHeadAttentionXL (pre-norm), both heads in one body ----------
    src2 = layernorm(x, ln1_g, ln1_b)                                   # (cs, D)

    # fused [q | k | v | p] projection: one (2*ks, D) @ (D, 4*hd) matmul
    x_all = jnp.concatenate([mem, src2, pos], axis=0)                   # (2*ks, D)
    proj = mm(x_all, w_all[...])                                        # (2*ks, 4*hd)

    q = proj[prev:ks, 0 * hd:1 * hd]                                    # (cs, hd)  (from src2 rows)
    k = proj[0:ks, 1 * hd:2 * hd]                                       # (ks, hd)  (mem ++ src2)
    v = proj[0:ks, 2 * hd:3 * hd]                                       # (ks, hd)
    p = proj[ks:2 * ks, 3 * hd:4 * hd]                                  # (ks, hd)  (from pos rows)

    qu = q + u_ref[...]                                                 # content bias
    qv = q + v_ref[...]                                                 # position bias

    # mask: forbidden where key index - query index > prev  (triu, diagonal = 1 + prev)
    ii = lax.broadcasted_iota(jnp.int32, (cs, ks), 0)
    jj = lax.broadcasted_iota(jnp.int32, (cs, ks), 1)
    forbidden = (jj - ii) > prev
    neg_big = f32(-1e30)
    scale = 1.0 / math.sqrt(d_head)

    head_outs = []
    for h in range(n_heads):                                            # unrolled (H = 2)
        sl = slice(h * d_head, (h + 1) * d_head)
        qu_h, qv_h = qu[:, sl], qv[:, sl]
        k_h, v_h, p_h = k[:, sl], v[:, sl], p[:, sl]

        # content attention: (q + u) . k^T
        content = lax.dot_general(qu_h, k_h, (((1,), (1,)), ((), ())),
                                  preferred_element_type=f32)           # (cs, ks)

        # positional attention: ONE matmul over zero-padded positions, then the
        # Transformer-XL relative shift via static row slices:
        #   pos_scores[i, j] = b_full[i, j + (cs - 1 - i)]
        p_pad = jnp.concatenate([p_h, jnp.zeros((cs - 1, d_head), f32)], axis=0)
        b_full = lax.dot_general(qv_h, p_pad, (((1,), (1,)), ((), ())),
                                 preferred_element_type=f32)            # (cs, ks + cs - 1)
        pos_scores = jnp.concatenate(
            [b_full[i:i + 1, cs - 1 - i:cs - 1 - i + ks] for i in range(cs)],
            axis=0)                                                     # (cs, ks)

        scores = jnp.where(forbidden, neg_big, content + pos_scores) * scale
        m = jnp.max(scores, axis=-1, keepdims=True)
        e = jnp.exp(scores - m)
        probs = e / jnp.sum(e, axis=-1, keepdims=True)
        head_outs.append(mm(probs, v_h))                                # (cs, d_head)

    attn = jnp.concatenate(head_outs, axis=1)                           # (cs, hd)
    mha_out = mm(attn, w_out[...])                                      # (cs, D)

    # ---------------- GRU-style gating (6 matmuls fused -> 3) --------------------------
    def gate(xg, yg, wy, by, wx, bx, wg, bgu):
        yy = mm(yg, wy[...]) + by[...]          # [Wr|Wz|Wg] y       (cs, 3D)
        xx = mm(xg, wx[...]) + bx[...]          # [Ur|Uz]   x        (cs, 2D)
        r = jax.nn.sigmoid(yy[:, 0:D] + xx[:, 0:D])
        z = jax.nn.sigmoid(yy[:, D:2 * D] + xx[:, D:2 * D] - gate_bias)
        hcand = jnp.tanh(yy[:, 2 * D:3 * D] + mm(r * xg, wg[...]) + bgu[...])
        return (1.0 - z) * xg + z * hcand

    src = gate(x, mha_out, g1_wy, g1_by, g1_wx, g1_bx, g1_wg, g1_bg)

    # ---------------- position-wise FF (pre-norm) + gate 2 -----------------------------
    src_n = layernorm(src, ln2_g, ln2_b)
    hff = jnp.maximum(mm(src_n, ff_w1[...]) + ff_b1[...], 0.0)
    ff_out = mm(hff, ff_w2[...]) + ff_b2[...]
    out = gate(src, ff_out, g2_wy, g2_by, g2_wx, g2_bx, g2_wg, g2_bg)   # (cs, D)

    # ---------------- memory update (emitted straight from the kernel) -----------------
    nmem0_ref[...] = jnp.concatenate([mem, x], axis=0)[cs:cs + prev]
    nmem1_ref[...] = jnp.concatenate([mem1_ref[...], out], axis=0)[cs:cs + prev]

    # ---------------- actor head: mean over seq + dense1..4 with ReLU ------------------
    s = jnp.mean(out, axis=0, keepdims=True)                            # (1, D)
    a = jnp.maximum(mm(s, hw1[...]) + hb1[...], 0.0)                    # (1, 512)
    a = jnp.maximum(mm(a, hw2[...]) + hb2[...], 0.0)                    # (1, 128)
    a = jnp.maximum(mm(a, hw3[...]) + hb3[...], 0.0)                    # (1, 128)
    act_ref[...] = jnp.maximum(mm(a, hw4[...]) + hb4[...], 0.0)         # (1, action_dim)


# ======================================================================================
# Wrapper
# ======================================================================================

def actor_forward(packed, aug_state, memory=None):
    assert N_LAYERS == 1
    cs, bs, D = aug_state.shape
    assert bs == 1 and D == D_MODEL, "memory_shape fixes batch = 1"
    if memory is None:
        memory = [jnp.zeros((MEM_LEN, bs, D), jnp.float32) for _ in range(N_LAYERS + 1)]
    prev = memory[0].shape[0]
    ks = cs + prev

    # sinusoidal relative positional embeddings for positions ks-1 .. 0 (constant glue)
    pos_ips = jnp.arange(ks - 1, -1, -1, dtype=jnp.float32)
    inv_freq = 1.0 / (10000.0 ** (jnp.arange(0, D, 2, dtype=jnp.float32) / D))
    sinusoid = pos_ips[:, None] * inv_freq[None, :]
    pos_embs = jnp.concatenate([jnp.sin(sinusoid), jnp.cos(sinusoid)], axis=-1)  # (ks, D)

    lp, hp = packed["layer0"], packed["head"]
    kern = functools.partial(
        _actor_fused_kernel, cs=cs, prev=prev, n_heads=N_HEADS, d_head=D_HEAD,
        gate_bias=GATE_BIAS, eps=1e-5)

    action, nm0, nm1 = pl.pallas_call(
        kern,
        out_shape=(jax.ShapeDtypeStruct((1, ACTION_DIM), jnp.float32),
                   jax.ShapeDtypeStruct((prev, D), jnp.float32),
                   jax.ShapeDtypeStruct((prev, D), jnp.float32)),
    )(aug_state.reshape(cs, D),
      memory[0].reshape(prev, D), memory[1].reshape(prev, D),
      pos_embs,
      lp["ln1_g"], lp["ln1_b"], lp["ln2_g"], lp["ln2_b"],
      lp["w_all"], packed["u"], packed["v"], lp["w_out"],
      *lp["gate1"], *lp["gate2"],
      lp["ff_w1"], lp["ff_b1"], lp["ff_w2"], lp["ff_b2"],
      hp["w1"], hp["b1"], hp["w2"], hp["b2"],
      hp["w3"], hp["b3"], hp["w4"], hp["b4"])

    new_memory = [lax.stop_gradient(nm0).reshape(prev, 1, D),
                  lax.stop_gradient(nm1).reshape(prev, 1, D)]
    return action, new_memory


# ======================================================================================
# Parameters: raw (mirrors the PyTorch module) + packed (fused / padded for the kernel)
# ======================================================================================

def init_params(key):
    keys = iter(jax.random.split(key, 64))

    def rnd(shape, scale=0.1):
        return jax.random.normal(next(keys), shape, dtype=jnp.float32) * scale

    D, H, DH, DFF = D_MODEL, N_HEADS, D_HEAD, D_FF

    def gate_params():
        return {n: {"w": rnd((D, D)), "b": rnd((D,), 0.01)}
                for n in ("wr", "ur", "wz", "uz", "wg", "ug")}

    def layer_params():
        return {
            "ln1_g": jnp.ones((D,), jnp.float32), "ln1_b": jnp.zeros((D,), jnp.float32),
            "ln2_g": jnp.ones((D,), jnp.float32), "ln2_b": jnp.zeros((D,), jnp.float32),
            "w_q": rnd((D, H * DH)), "w_kv": rnd((D, 2 * H * DH)), "w_p": rnd((D, H * DH)),
            "w_out": rnd((H * DH, D)),
            "gate1": gate_params(), "gate2": gate_params(),
            "ff_w1": rnd((D, DFF)), "ff_b1": rnd((DFF,), 0.01),
            "ff_w2": rnd((DFF, D)), "ff_b2": rnd((D,), 0.01),
        }

    head = {
        "w1": rnd((D, HEAD_H1)), "b1": rnd((HEAD_H1,), 0.01),
        "w2": rnd((HEAD_H1, 128)), "b2": rnd((128,), 0.01),
        "w3": rnd((128, 128)), "b3": rnd((128,), 0.01),
        "w4": rnd((128, ACTION_DIM)), "b4": rnd((ACTION_DIM,), 0.01),
    }
    return {"layers": [layer_params() for _ in range(N_LAYERS)],
            "u": rnd((H, DH)), "v": rnd((H, DH)), "head": head}


def pack_params(params):
    """One-time packing: fused projection / gating weights, lane-padded head, 2-D biases."""
    D = D_MODEL

    def pack_gate(gp):
        wy = jnp.concatenate([gp["wr"]["w"], gp["wz"]["w"], gp["wg"]["w"]], axis=1)  # (D,3D) on y
        by = jnp.concatenate([gp["wr"]["b"], gp["wz"]["b"], gp["wg"]["b"]]).reshape(1, 3 * D)
        wx = jnp.concatenate([gp["ur"]["w"], gp["uz"]["w"]], axis=1)                 # (D,2D) on x
        bx = jnp.concatenate([gp["ur"]["b"], gp["uz"]["b"]]).reshape(1, 2 * D)
        return (wy, by, wx, bx, gp["ug"]["w"], gp["ug"]["b"].reshape(1, D))

    lp = params["layers"][0]
    layer = {
        "ln1_g": lp["ln1_g"].reshape(1, D), "ln1_b": lp["ln1_b"].reshape(1, D),
        "ln2_g": lp["ln2_g"].reshape(1, D), "ln2_b": lp["ln2_b"].reshape(1, D),
        # fused [q | kv | p] projection: one (D, 4*H*DH) = (32, 256) weight
        "w_all": jnp.concatenate([lp["w_q"], lp["w_kv"], lp["w_p"]], axis=1),
        "w_out": lp["w_out"],
        "gate1": pack_gate(lp["gate1"]), "gate2": pack_gate(lp["gate2"]),
        "ff_w1": lp["ff_w1"], "ff_b1": lp["ff_b1"].reshape(1, -1),
        "ff_w2": lp["ff_w2"], "ff_b2": lp["ff_b2"].reshape(1, -1),
    }

    hp = params["head"]
    pad = HEAD_H1_PAD - HEAD_H1
    head = {
        "w1": jnp.pad(hp["w1"], ((0, 0), (0, pad))),          # zero-padded: identical math
        "b1": jnp.pad(hp["b1"], (0, pad)).reshape(1, -1),
        "w2": jnp.pad(hp["w2"], ((0, pad), (0, 0))),
        "b2": hp["b2"].reshape(1, -1),
        "w3": hp["w3"], "b3": hp["b3"].reshape(1, -1),
        "w4": hp["w4"], "b4": hp["b4"].reshape(1, -1),
    }
    return {"layer0": layer, "head": head,
            "u": params["u"].reshape(1, -1), "v": params["v"].reshape(1, -1)}


# ======================================================================================
# Pure-JAX reference (mirrors the PyTorch module; used only to validate the fused kernel)
# ======================================================================================

def _reference_forward(params, aug_state, memory):
    cs, bs, D = aug_state.shape
    prev = memory[0].shape[0]
    ks = cs + prev
    H, dh = N_HEADS, D_HEAD

    def ln(t, g, b, eps=1e-5):
        mu = t.mean(-1, keepdims=True)
        var = ((t - mu) ** 2).mean(-1, keepdims=True)
        return (t - mu) / jnp.sqrt(var + eps) * g + b

    pos_ips = jnp.arange(ks - 1, -1, -1, dtype=jnp.float32)
    inv_freq = 1.0 / (10000.0 ** (jnp.arange(0, D, 2, dtype=jnp.float32) / D))
    sinusoid = pos_ips[:, None] * inv_freq[None, :]
    pos_embs = jnp.concatenate([jnp.sin(sinusoid), jnp.cos(sinusoid)], axis=-1)

    lp = params["layers"][0]
    x = aug_state[:, 0, :]
    mem = memory[0][:, 0, :]

    src2 = ln(x, lp["ln1_g"], lp["ln1_b"])
    x_mem = jnp.concatenate([mem, src2], axis=0)
    kv = x_mem @ lp["w_kv"]
    k = kv[:, :H * dh].reshape(ks, H, dh)
    v = kv[:, H * dh:].reshape(ks, H, dh)
    q = (src2 @ lp["w_q"]).reshape(cs, H, dh)
    p = (pos_embs @ lp["w_p"]).reshape(ks, H, dh)

    content = jnp.einsum("ihd,jhd->ijh", q + params["u"][None], k)
    pos_att = jnp.einsum("ihd,jhd->ijh", q + params["v"][None], p)
    idx_i = jnp.arange(cs)[:, None]
    idx_j = jnp.arange(ks)[None, :]
    shift_idx = idx_j + (cs - 1 - idx_i)
    p_pad = jnp.concatenate([pos_att, jnp.zeros((cs, cs - 1, H), jnp.float32)], axis=1)
    pos_shifted = jnp.take_along_axis(
        p_pad, jnp.broadcast_to(shift_idx[:, :, None], (cs, ks, H)), axis=1)

    mask = (idx_j - idx_i) > prev
    scores = jnp.where(mask[:, :, None], -1e30, content + pos_shifted) / jnp.sqrt(dh * 1.0)
    probs = jax.nn.softmax(scores, axis=1)
    attn_out = jnp.einsum("ijh,jhd->ihd", probs, v).reshape(cs, H * dh)
    mha_out = attn_out @ lp["w_out"]

    def gate_ref(gp, xg, yg):
        def lin(a, m):
            return a @ m["w"] + m["b"]
        r = jax.nn.sigmoid(lin(yg, gp["wr"]) + lin(xg, gp["ur"]))
        z = jax.nn.sigmoid(lin(yg, gp["wz"]) + lin(xg, gp["uz"]) - GATE_BIAS)
        h = jnp.tanh(lin(yg, gp["wg"]) + lin(r * xg, gp["ug"]))
        return (1.0 - z) * xg + z * h

    src = gate_ref(lp["gate1"], x, mha_out)
    src_n = ln(src, lp["ln2_g"], lp["ln2_b"])
    ff = jnp.maximum(src_n @ lp["ff_w1"] + lp["ff_b1"], 0.0) @ lp["ff_w2"] + lp["ff_b2"]
    out = gate_ref(lp["gate2"], src, ff)

    hp = params["head"]
    s = out.mean(0, keepdims=True)
    a = jnp.maximum(s @ hp["w1"] + hp["b1"], 0.0)
    a = jnp.maximum(a @ hp["w2"] + hp["b2"], 0.0)
    a = jnp.maximum(a @ hp["w3"] + hp["b3"], 0.0)
    a = jnp.maximum(a @ hp["w4"] + hp["b4"], 0.0)

    new_mem = []
    for m, h in zip([memory[0][:, 0, :], memory[1][:, 0, :]], [x, out]):
        cat = jnp.concatenate([m, h], axis=0)
        new_mem.append(cat[cs:cs + prev])
    return a, new_mem


# ======================================================================================

if __name__ == "__main__":
    key = jax.random.PRNGKey(0)
    pkey, xkey = jax.random.split(key)
    raw_params = init_params(pkey)
    packed = pack_params(raw_params)

    aug_state = jax.random.normal(xkey, (SEQ_LEN, 1, D_MODEL), dtype=jnp.float32)

    action, new_memory = actor_forward(packed, aug_state)
    action = jax.block_until_ready(action)

    assert action.shape == (1, ACTION_DIM), action.shape
    assert new_memory[0].shape == (MEM_LEN, 1, D_MODEL)
    assert bool(jnp.all(jnp.isfinite(action)))

    # cross-check the fused kernel against the plain-JAX mirror of the module
    init_mem = [jnp.zeros((MEM_LEN, 1, D_MODEL), jnp.float32) for _ in range(N_LAYERS + 1)]
    with jax.default_matmul_precision("highest"):
        ref_action, ref_mem = _reference_forward(raw_params, aug_state, init_mem)
    assert bool(jnp.allclose(action, ref_action, rtol=2e-2, atol=2e-2))
    assert bool(jnp.allclose(new_memory[1][:, 0, :], ref_mem[1], rtol=2e-2, atol=2e-2))

    # second step reusing the returned memory (recurrent usage, as in Actor.forward)
    action2, _ = actor_forward(packed, aug_state, new_memory)
    action2 = jax.block_until_ready(action2)
    assert bool(jnp.all(jnp.isfinite(action2)))

    print("KERNEL_OK")
</pallas_src>

<mosaic_0001>
module attributes {stable_mosaic.version = 11 : i64} {
  func.func @_actor_fused_kernel(%arg0: memref<8x32xf32, #tpu.memory_space<vmem>>, %arg1: memref<6x32xf32, #tpu.memory_space<vmem>>, %arg2: memref<6x32xf32, #tpu.memory_space<vmem>>, %arg3: memref<14x32xf32, #tpu.memory_space<vmem>>, %arg4: memref<1x32xf32, #tpu.memory_space<vmem>>, %arg5: memref<1x32xf32, #tpu.memory_space<vmem>>, %arg6: memref<1x32xf32, #tpu.memory_space<vmem>>, %arg7: memref<1x32xf32, #tpu.memory_space<vmem>>, %arg8: memref<32x256xf32, #tpu.memory_space<vmem>>, %arg9: memref<1x64xf32, #tpu.memory_space<vmem>>, %arg10: memref<1x64xf32, #tpu.memory_space<vmem>>, %arg11: memref<64x32xf32, #tpu.memory_space<vmem>>, %arg12: memref<32x96xf32, #tpu.memory_space<vmem>>, %arg13: memref<1x96xf32, #tpu.memory_space<vmem>>, %arg14: memref<32x64xf32, #tpu.memory_space<vmem>>, %arg15: memref<1x64xf32, #tpu.memory_space<vmem>>, %arg16: memref<32x32xf32, #tpu.memory_space<vmem>>, %arg17: memref<1x32xf32, #tpu.memory_space<vmem>>, %arg18: memref<32x96xf32, #tpu.memory_space<vmem>>, %arg19: memref<1x96xf32, #tpu.memory_space<vmem>>, %arg20: memref<32x64xf32, #tpu.memory_space<vmem>>, %arg21: memref<1x64xf32, #tpu.memory_space<vmem>>, %arg22: memref<32x32xf32, #tpu.memory_space<vmem>>, %arg23: memref<1x32xf32, #tpu.memory_space<vmem>>, %arg24: memref<32x64xf32, #tpu.memory_space<vmem>>, %arg25: memref<1x64xf32, #tpu.memory_space<vmem>>, %arg26: memref<64x32xf32, #tpu.memory_space<vmem>>, %arg27: memref<1x32xf32, #tpu.memory_space<vmem>>, %arg28: memref<32x512xf32, #tpu.memory_space<vmem>>, %arg29: memref<1x512xf32, #tpu.memory_space<vmem>>, %arg30: memref<512x128xf32, #tpu.memory_space<vmem>>, %arg31: memref<1x128xf32, #tpu.memory_space<vmem>>, %arg32: memref<128x128xf32, #tpu.memory_space<vmem>>, %arg33: memref<1x128xf32, #tpu.memory_space<vmem>>, %arg34: memref<128x8xf32, #tpu.memory_space<vmem>>, %arg35: memref<1x8xf32, #tpu.memory_space<vmem>>, %arg36: memref<1x8xf32, #tpu.memory_space<vmem>>, %arg37: memref<6x32xf32, #tpu.memory_space<vmem>>, %arg38: memref<6x32xf32, #tpu.memory_space<vmem>>) attributes {dimension_semantics = [], scalar_prefetch = 0 : i64, scratch_operands = 0 : i64, tpu.core_type = #tpu.core_type<tc>} {
    %c0 = arith.constant 0 : index
    %c0_0 = arith.constant 0 : index
    %0 = vector.load %arg0[%c0, %c0_0] : memref<8x32xf32, #tpu.memory_space<vmem>>, vector<8x32xf32>
    %c0_1 = arith.constant 0 : index
    %c0_2 = arith.constant 0 : index
    %1 = vector.load %arg1[%c0_1, %c0_2] : memref<6x32xf32, #tpu.memory_space<vmem>>, vector<6x32xf32>
    %c0_3 = arith.constant 0 : index
    %c0_4 = arith.constant 0 : index
    %2 = vector.load %arg3[%c0_3, %c0_4] : memref<14x32xf32, #tpu.memory_space<vmem>>, vector<14x32xf32>
    %cst = arith.constant dense<0.000000e+00> : vector<8xf32>
    %3 = vector.multi_reduction <add>, %0, %cst [1] : vector<8x32xf32> to vector<8xf32>
    %4 = vector.shape_cast %3 : vector<8xf32> to vector<8x1xf32>
    %cst_5 = arith.constant 3.200000e+01 : f32
    %5 = vector.broadcast %cst_5 : f32 to vector<8x1xf32>
    %6 = arith.divf %4, %5 : vector<8x1xf32>
    %7 = vector.broadcast %6 : vector<8x1xf32> to vector<8x32xf32>
    %8 = arith.subf %0, %7 : vector<8x32xf32>
    %9 = arith.mulf %8, %8 : vector<8x32xf32>
    %cst_6 = arith.constant dense<0.000000e+00> : vector<8xf32>
    %10 = vector.multi_reduction <add>, %9, %cst_6 [1] : vector<8x32xf32> to vector<8xf32>
    %11 = vector.shape_cast %10 : vector<8xf32> to vector<8x1xf32>
    %cst_7 = arith.constant 3.200000e+01 : f32
    %12 = vector.broadcast %cst_7 : f32 to vector<8x1xf32>
    %13 = arith.divf %11, %12 : vector<8x1xf32>
    %14 = vector.broadcast %6 : vector<8x1xf32> to vector<8x32xf32>
    %15 = arith.subf %0, %14 : vector<8x32xf32>
    %cst_8 = arith.constant 9.99999974E-6 : f32
    %16 = vector.broadcast %cst_8 : f32 to vector<8x1xf32>
    %17 = arith.addf %13, %16 : vector<8x1xf32>
    %18 = math.rsqrt %17 : vector<8x1xf32>
    %19 = vector.broadcast %18 : vector<8x1xf32> to vector<8x32xf32>
    %20 = arith.mulf %15, %19 : vector<8x32xf32>
    %c0_9 = arith.constant 0 : index
    %c0_10 = arith.constant 0 : index
    %21 = vector.load %arg4[%c0_9, %c0_10] : memref<1x32xf32, #tpu.memory_space<vmem>>, vector<1x32xf32>
    %22 = vector.broadcast %21 : vector<1x32xf32> to vector<8x32xf32>
    %23 = arith.mulf %20, %22 : vector<8x32xf32>
    %c0_11 = arith.constant 0 : index
    %c0_12 = arith.constant 0 : index
    %24 = vector.load %arg5[%c0_11, %c0_12] : memref<1x32xf32, #tpu.memory_space<vmem>>, vector<1x32xf32>
    %25 = vector.broadcast %24 : vector<1x32xf32> to vector<8x32xf32>
    %26 = arith.addf %23, %25 : vector<8x32xf32>
    %27 = tpu.concatenate %1, %26, %2 in 0 : vector<6x32xf32>, vector<8x32xf32>, vector<14x32xf32> -> vector<28x32xf32>
    %c0_13 = arith.constant 0 : index
    %c0_14 = arith.constant 0 : index
    %28 = vector.load %arg8[%c0_13, %c0_14] : memref<32x256xf32, #tpu.memory_space<vmem>>, vector<32x256xf32>
    %cst_15 = arith.constant dense<0.000000e+00> : vector<28x256xf32>
    %29 = tpu.matmul %27, %28, %cst_15 {dimension_numbers = #tpu.dot_dimension_numbers<[1], [0], [0], [1], [0, 0, 1, 1], [], []>} : vector<28x32xf32>, vector<32x256xf32>, vector<28x256xf32> -> vector<28x256xf32>
    %30 = vector.extract_strided_slice %29 {offsets = [6, 0], sizes = [8, 64], strides = [1, 1]} : vector<28x256xf32> to vector<8x64xf32>
    %31 = vector.extract_strided_slice %29 {offsets = [0, 64], sizes = [14, 64], strides = [1, 1]} : vector<28x256xf32> to vector<14x64xf32>
    %32 = vector.extract_strided_slice %29 {offsets = [0, 128], sizes = [14, 64], strides = [1, 1]} : vector<28x256xf32> to vector<14x64xf32>
    %33 = vector.extract_strided_slice %29 {offsets = [14, 192], sizes = [14, 64], strides = [1, 1]} : vector<28x256xf32> to vector<14x64xf32>
    %c0_16 = arith.constant 0 : index
    %c0_17 = arith.constant 0 : index
    %34 = vector.load %arg9[%c0_16, %c0_17] : memref<1x64xf32, #tpu.memory_space<vmem>>, vector<1x64xf32>
    %35 = vector.broadcast %34 : vector<1x64xf32> to vector<8x64xf32>
    %36 = arith.addf %30, %35 : vector<8x64xf32>
    %c0_18 = arith.constant 0 : index
    %c0_19 = arith.constant 0 : index
    %37 = vector.load %arg10[%c0_18, %c0_19] : memref<1x64xf32, #tpu.memory_space<vmem>>, vector<1x64xf32>
    %38 = vector.broadcast %37 : vector<1x64xf32> to vector<8x64xf32>
    %39 = arith.addf %30, %38 : vector<8x64xf32>
    %40 = tpu.iota {dimensions = array<i32: 0>} : vector<8x14xi32>
    %41 = tpu.iota {dimensions = array<i32: 1>} : vector<8x14xi32>
    %42 = arith.subi %41, %40 : vector<8x14xi32>
    %c6_i32 = arith.constant 6 : i32
    %43 = vector.broadcast %c6_i32 : i32 to vector<8x14xi32>
    %44 = arith.cmpi sgt, %42, %43 : vector<8x14xi32>
    %45 = vector.extract_strided_slice %36 {offsets = [0, 0], sizes = [8, 32], strides = [1, 1]} : vector<8x64xf32> to vector<8x32xf32>
    %46 = vector.extract_strided_slice %39 {offsets = [0, 0], sizes = [8, 32], strides = [1, 1]} : vector<8x64xf32> to vector<8x32xf32>
    %47 = vector.extract_strided_slice %31 {offsets = [0, 0], sizes = [14, 32], strides = [1, 1]} : vector<14x64xf32> to vector<14x32xf32>
    %48 = vector.extract_strided_slice %32 {offsets = [0, 0], sizes = [14, 32], strides = [1, 1]} : vector<14x64xf32> to vector<14x32xf32>
    %49 = vector.extract_strided_slice %33 {offsets = [0, 0], sizes = [14, 32], strides = [1, 1]} : vector<14x64xf32> to vector<14x32xf32>
    %cst_20 = arith.constant dense<0.000000e+00> : vector<8x14xf32>
    %50 = tpu.matmul %45, %47, %cst_20 {dimension_numbers = #tpu.dot_dimension_numbers<[1], [1], [0], [0], [0, 0, 1, 0], [], []>} : vector<8x32xf32>, vector<14x32xf32>, vector<8x14xf32> -> vector<8x14xf32>
    %cst_21 = arith.constant 0.000000e+00 : f32
    %51 = vector.broadcast %cst_21 : f32 to vector<7x32xf32>
    %52 = tpu.concatenate %49, %51 in 0 : vector<14x32xf32>, vector<7x32xf32> -> vector<21x32xf32>
    %cst_22 = arith.constant dense<0.000000e+00> : vector<8x21xf32>
    %53 = tpu.matmul %46, %52, %cst_22 {dimension_numbers = #tpu.dot_dimension_numbers<[1], [1], [0], [0], [0, 0, 1, 0], [], []>} : vector<8x32xf32>, vector<21x32xf32>, vector<8x21xf32> -> vector<8x21xf32>
    %54 = vector.extract_strided_slice %53 {offsets = [0, 7], sizes = [1, 14], strides = [1, 1]} : vector<8x21xf32> to vector<1x14xf32>
    %55 = vector.extract_strided_slice %53 {offsets = [1, 6], sizes = [1, 14], strides = [1, 1]} : vector<8x21xf32> to vector<1x14xf32>
    %56 = vector.extract_strided_slice %53 {offsets = [2, 5], sizes = [1, 14], strides = [1, 1]} : vector<8x21xf32> to vector<1x14xf32>
    %57 = vector.extract_strided_slice %53 {offsets = [3, 4], sizes = [1, 14], strides = [1, 1]} : vector<8x21xf32> to vector<1x14xf32>
    %58 = vector.extract_strided_slice %53 {offsets = [4, 3], sizes = [1, 14], strides = [1, 1]} : vector<8x21xf32> to vector<1x14xf32>
    %59 = vector.extract_strided_slice %53 {offsets = [5, 2], sizes = [1, 14], strides = [1, 1]} : vector<8x21xf32> to vector<1x14xf32>
    %60 = vector.extract_strided_slice %53 {offsets = [6, 1], sizes = [1, 14], strides = [1, 1]} : vector<8x21xf32> to vector<1x14xf32>
    %61 = vector.extract_strided_slice %53 {offsets = [7, 0], sizes = [1, 14], strides = [1, 1]} : vector<8x21xf32> to vector<1x14xf32>
    %62 = tpu.concatenate %54, %55, %56, %57, %58, %59, %60, %61 in 0 : vector<1x14xf32>, vector<1x14xf32>, vector<1x14xf32>, vector<1x14xf32>, vector<1x14xf32>, vector<1x14xf32>, vector<1x14xf32>, vector<1x14xf32> -> vector<8x14xf32>
    %63 = arith.addf %50, %62 : vector<8x14xf32>
    %cst_23 = arith.constant -1.000000e+30 : f32
    %64 = vector.broadcast %cst_23 : f32 to vector<8x14xf32>
    %65 = arith.select %44, %64, %63 : vector<8x14xi1>, vector<8x14xf32>
    %cst_24 = arith.constant 0.176776692 : f32
    %66 = vector.broadcast %cst_24 : f32 to vector<8x14xf32>
    %67 = arith.mulf %65, %66 : vector<8x14xf32>
    %cst_25 = arith.constant dense<0xFF800000> : vector<8xf32>
    %68 = vector.multi_reduction <maximumf>, %67, %cst_25 [1] : vector<8x14xf32> to vector<8xf32>
    %69 = vector.shape_cast %68 : vector<8xf32> to vector<8x1xf32>
    %70 = vector.broadcast %69 : vector<8x1xf32> to vector<8x14xf32>
    %71 = arith.subf %67, %70 : vector<8x14xf32>
    %72 = math.exp %71 : vector<8x14xf32>
    %cst_26 = arith.constant dense<0.000000e+00> : vector<8xf32>
    %73 = vector.multi_reduction <add>, %72, %cst_26 [1] : vector<8x14xf32> to vector<8xf32>
    %74 = vector.shape_cast %73 : vector<8xf32> to vector<8x1xf32>
    %75 = vector.broadcast %74 : vector<8x1xf32> to vector<8x14xf32>
    %76 = arith.divf %72, %75 : vector<8x14xf32>
    %cst_27 = arith.constant dense<0.000000e+00> : vector<8x32xf32>
    %77 = tpu.matmul %76, %48, %cst_27 {dimension_numbers = #tpu.dot_dimension_numbers<[1], [0], [0], [1], [0, 0, 1, 1], [], []>} : vector<8x14xf32>, vector<14x32xf32>, vector<8x32xf32> -> vector<8x32xf32>
    %78 = vector.extract_strided_slice %36 {offsets = [0, 32], sizes = [8, 32], strides = [1, 1]} : vector<8x64xf32> to vector<8x32xf32>
    %79 = vector.extract_strided_slice %39 {offsets = [0, 32], sizes = [8, 32], strides = [1, 1]} : vector<8x64xf32> to vector<8x32xf32>
    %80 = vector.extract_strided_slice %31 {offsets = [0, 32], sizes = [14, 32], strides = [1, 1]} : vector<14x64xf32> to vector<14x32xf32>
    %81 = vector.extract_strided_slice %32 {offsets = [0, 32], sizes = [14, 32], strides = [1, 1]} : vector<14x64xf32> to vector<14x32xf32>
    %82 = vector.extract_strided_slice %33 {offsets = [0, 32], sizes = [14, 32], strides = [1, 1]} : vector<14x64xf32> to vector<14x32xf32>
    %cst_28 = arith.constant dense<0.000000e+00> : vector<8x14xf32>
    %83 = tpu.matmul %78, %80, %cst_28 {dimension_numbers = #tpu.dot_dimension_numbers<[1], [1], [0], [0], [0, 0, 1, 0], [], []>} : vector<8x32xf32>, vector<14x32xf32>, vector<8x14xf32> -> vector<8x14xf32>
    %cst_29 = arith.constant 0.000000e+00 : f32
    %84 = vector.broadcast %cst_29 : f32 to vector<7x32xf32>
    %85 = tpu.concatenate %82, %84 in 0 : vector<14x32xf32>, vector<7x32xf32> -> vector<21x32xf32>
    %cst_30 = arith.constant dense<0.000000e+00> : vector<8x21xf32>
    %86 = tpu.matmul %79, %85, %cst_30 {dimension_numbers = #tpu.dot_dimension_numbers<[1], [1], [0], [0], [0, 0, 1, 0], [], []>} : vector<8x32xf32>, vector<21x32xf32>, vector<8x21xf32> -> vector<8x21xf32>
    %87 = vector.extract_strided_slice %86 {offsets = [0, 7], sizes = [1, 14], strides = [1, 1]} : vector<8x21xf32> to vector<1x14xf32>
    %88 = vector.extract_strided_slice %86 {offsets = [1, 6], sizes = [1, 14], strides = [1, 1]} : vector<8x21xf32> to vector<1x14xf32>
    %89 = vector.extract_strided_slice %86 {offsets = [2, 5], sizes = [1, 14], strides = [1, 1]} : vector<8x21xf32> to vector<1x14xf32>
    %90 = vector.extract_strided_slice %86 {offsets = [3, 4], sizes = [1, 14], strides = [1, 1]} : vector<8x21xf32> to vector<1x14xf32>
    %91 = vector.extract_strided_slice %86 {offsets = [4, 3], sizes = [1, 14], strides = [1, 1]} : vector<8x21xf32> to vector<1x14xf32>
    %92 = vector.extract_strided_slice %86 {offsets = [5, 2], sizes = [1, 14], strides = [1, 1]} : vector<8x21xf32> to vector<1x14xf32>
    %93 = vector.extract_strided_slice %86 {offsets = [6, 1], sizes = [1, 14], strides = [1, 1]} : vector<8x21xf32> to vector<1x14xf32>
    %94 = vector.extract_strided_slice %86 {offsets = [7, 0], sizes = [1, 14], strides = [1, 1]} : vector<8x21xf32> to vector<1x14xf32>
    %95 = tpu.concatenate %87, %88, %89, %90, %91, %92, %93, %94 in 0 : vector<1x14xf32>, vector<1x14xf32>, vector<1x14xf32>, vector<1x14xf32>, vector<1x14xf32>, vector<1x14xf32>, vector<1x14xf32>, vector<1x14xf32> -> vector<8x14xf32>
    %96 = arith.addf %83, %95 : vector<8x14xf32>
    %cst_31 = arith.constant -1.000000e+30 : f32
    %97 = vector.broadcast %cst_31 : f32 to vector<8x14xf32>
    %98 = arith.select %44, %97, %96 : vector<8x14xi1>, vector<8x14xf32>
    %cst_32 = arith.constant 0.176776692 : f32
    %99 = vector.broadcast %cst_32 : f32 to vector<8x14xf32>
    %100 = arith.mulf %98, %99 : vector<8x14xf32>
    %cst_33 = arith.constant dense<0xFF800000> : vector<8xf32>
    %101 = vector.multi_reduction <maximumf>, %100, %cst_33 [1] : vector<8x14xf32> to vector<8xf32>
    %102 = vector.shape_cast %101 : vector<8xf32> to vector<8x1xf32>
    %103 = vector.broadcast %102 : vector<8x1xf32> to vector<8x14xf32>
    %104 = arith.subf %100, %103 : vector<8x14xf32>
    %105 = math.exp %104 : vector<8x14xf32>
    %cst_34 = arith.constant dense<0.000000e+00> : vector<8xf32>
    %106 = vector.multi_reduction <add>, %105, %cst_34 [1] : vector<8x14xf32> to vector<8xf32>
    %107 = vector.shape_cast %106 : vector<8xf32> to vector<8x1xf32>
    %108 = vector.broadcast %107 : vector<8x1xf32> to vector<8x14xf32>
    %109 = arith.divf %105, %108 : vector<8x14xf32>
    %cst_35 = arith.constant dense<0.000000e+00> : vector<8x32xf32>
    %110 = tpu.matmul %109, %81, %cst_35 {dimension_numbers = #tpu.dot_dimension_numbers<[1], [0], [0], [1], [0, 0, 1, 1], [], []>} : vector<8x14xf32>, vector<14x32xf32>, vector<8x32xf32> -> vector<8x32xf32>
    %111 = tpu.concatenate %77, %110 in 1 : vector<8x32xf32>, vector<8x32xf32> -> vector<8x64xf32>
    %c0_36 = arith.constant 0 : index
    %c0_37 = arith.constant 0 : index
    %112 = vector.load %arg11[%c0_36, %c0_37] : memref<64x32xf32, #tpu.memory_space<vmem>>, vector<64x32xf32>
    %cst_38 = arith.constant dense<0.000000e+00> : vector<8x32xf32>
    %113 = tpu.matmul %111, %112, %cst_38 {dimension_numbers = #tpu.dot_dimension_numbers<[1], [0], [0], [1], [0, 0, 1, 1], [], []>} : vector<8x64xf32>, vector<64x32xf32>, vector<8x32xf32> -> vector<8x32xf32>
    %c0_39 = arith.constant 0 : index
    %c0_40 = arith.constant 0 : index
    %114 = vector.load %arg12[%c0_39, %c0_40] : memref<32x96xf32, #tpu.memory_space<vmem>>, vector<32x96xf32>
    %cst_41 = arith.constant dense<0.000000e+00> : vector<8x96xf32>
    %115 = tpu.matmul %113, %114, %cst_41 {dimension_numbers = #tpu.dot_dimension_numbers<[1], [0], [0], [1], [0, 0, 1, 1], [], []>} : vector<8x32xf32>, vector<32x96xf32>, vector<8x96xf32> -> vector<8x96xf32>
    %c0_42 = arith.constant 0 : index
    %c0_43 = arith.constant 0 : index
    %116 = vector.load %arg13[%c0_42, %c0_43] : memref<1x96xf32, #tpu.memory_space<vmem>>, vector<1x96xf32>
    %117 = vector.broadcast %116 : vector<1x96xf32> to vector<8x96xf32>
    %118 = arith.addf %115, %117 : vector<8x96xf32>
    %c0_44 = arith.constant 0 : index
    %c0_45 = arith.constant 0 : index
    %119 = vector.load %arg14[%c0_44, %c0_45] : memref<32x64xf32, #tpu.memory_space<vmem>>, vector<32x64xf32>
    %cst_46 = arith.constant dense<0.000000e+00> : vector<8x64xf32>
    %120 = tpu.matmul %0, %119, %cst_46 {dimension_numbers = #tpu.dot_dimension_numbers<[1], [0], [0], [1], [0, 0, 1, 1], [], []>} : vector<8x32xf32>, vector<32x64xf32>, vector<8x64xf32> -> vector<8x64xf32>
    %c0_47 = arith.constant 0 : index
    %c0_48 = arith.constant 0 : index
    %121 = vector.load %arg15[%c0_47, %c0_48] : memref<1x64xf32, #tpu.memory_space<vmem>>, vector<1x64xf32>
    %122 = vector.broadcast %121 : vector<1x64xf32> to vector<8x64xf32>
    %123 = arith.addf %120, %122 : vector<8x64xf32>
    %124 = vector.extract_strided_slice %118 {offsets = [0, 0], sizes = [8, 32], strides = [1, 1]} : vector<8x96xf32> to vector<8x32xf32>
    %125 = vector.extract_strided_slice %123 {offsets = [0, 0], sizes = [8, 32], strides = [1, 1]} : vector<8x64xf32> to vector<8x32xf32>
    %126 = arith.addf %124, %125 : vector<8x32xf32>
    %127 = arith.negf %126 : vector<8x32xf32>
    %128 = math.exp %127 : vector<8x32xf32>
    %cst_49 = arith.constant 1.000000e+00 : f32
    %129 = vector.broadcast %cst_49 : f32 to vector<8x32xf32>
    %130 = arith.addf %129, %128 : vector<8x32xf32>
    %131 = arith.divf %129, %130 : vector<8x32xf32>
    %132 = vector.extract_strided_slice %118 {offsets = [0, 32], sizes = [8, 32], strides = [1, 1]} : vector<8x96xf32> to vector<8x32xf32>
    %133 = vector.extract_strided_slice %123 {offsets = [0, 32], sizes = [8, 32], strides = [1, 1]} : vector<8x64xf32> to vector<8x32xf32>
    %134 = arith.addf %132, %133 : vector<8x32xf32>
    %cst_50 = arith.constant 1.000000e-01 : f32
    %135 = vector.broadcast %cst_50 : f32 to vector<8x32xf32>
    %136 = arith.subf %134, %135 : vector<8x32xf32>
    %137 = arith.negf %136 : vector<8x32xf32>
    %138 = math.exp %137 : vector<8x32xf32>
    %cst_51 = arith.constant 1.000000e+00 : f32
    %139 = vector.broadcast %cst_51 : f32 to vector<8x32xf32>
    %140 = arith.addf %139, %138 : vector<8x32xf32>
    %141 = arith.divf %139, %140 : vector<8x32xf32>
    %142 = vector.extract_strided_slice %118 {offsets = [0, 64], sizes = [8, 32], strides = [1, 1]} : vector<8x96xf32> to vector<8x32xf32>
    %143 = arith.mulf %131, %0 : vector<8x32xf32>
    %c0_52 = arith.constant 0 : index
    %c0_53 = arith.constant 0 : index
    %144 = vector.load %arg16[%c0_52, %c0_53] : memref<32x32xf32, #tpu.memory_space<vmem>>, vector<32x32xf32>
    %cst_54 = arith.constant dense<0.000000e+00> : vector<8x32xf32>
    %145 = tpu.matmul %143, %144, %cst_54 {dimension_numbers = #tpu.dot_dimension_numbers<[1], [0], [0], [1], [0, 0, 1, 1], [], []>} : vector<8x32xf32>, vector<32x32xf32>, vector<8x32xf32> -> vector<8x32xf32>
    %146 = arith.addf %142, %145 : vector<8x32xf32>
    %c0_55 = arith.constant 0 : index
    %c0_56 = arith.constant 0 : index
    %147 = vector.load %arg17[%c0_55, %c0_56] : memref<1x32xf32, #tpu.memory_space<vmem>>, vector<1x32xf32>
    %148 = vector.broadcast %147 : vector<1x32xf32> to vector<8x32xf32>
    %149 = arith.addf %146, %148 : vector<8x32xf32>
    %150 = math.tanh %149 : vector<8x32xf32>
    %cst_57 = arith.constant 1.000000e+00 : f32
    %151 = vector.broadcast %cst_57 : f32 to vector<8x32xf32>
    %152 = arith.subf %151, %141 : vector<8x32xf32>
    %153 = arith.mulf %152, %0 : vector<8x32xf32>
    %154 = arith.mulf %141, %150 : vector<8x32xf32>
    %155 = arith.addf %153, %154 : vector<8x32xf32>
    %cst_58 = arith.constant dense<0.000000e+00> : vector<8xf32>
    %156 = vector.multi_reduction <add>, %155, %cst_58 [1] : vector<8x32xf32> to vector<8xf32>
    %157 = vector.shape_cast %156 : vector<8xf32> to vector<8x1xf32>
    %cst_59 = arith.constant 3.200000e+01 : f32
    %158 = vector.broadcast %cst_59 : f32 to vector<8x1xf32>
    %159 = arith.divf %157, %158 : vector<8x1xf32>
    %160 = vector.broadcast %159 : vector<8x1xf32> to vector<8x32xf32>
    %161 = arith.subf %155, %160 : vector<8x32xf32>
    %162 = arith.mulf %161, %161 : vector<8x32xf32>
    %cst_60 = arith.constant dense<0.000000e+00> : vector<8xf32>
    %163 = vector.multi_reduction <add>, %162, %cst_60 [1] : vector<8x32xf32> to vector<8xf32>
    %164 = vector.shape_cast %163 : vector<8xf32> to vector<8x1xf32>
    %cst_61 = arith.constant 3.200000e+01 : f32
    %165 = vector.broadcast %cst_61 : f32 to vector<8x1xf32>
    %166 = arith.divf %164, %165 : vector<8x1xf32>
    %167 = vector.broadcast %159 : vector<8x1xf32> to vector<8x32xf32>
    %168 = arith.subf %155, %167 : vector<8x32xf32>
    %cst_62 = arith.constant 9.99999974E-6 : f32
    %169 = vector.broadcast %cst_62 : f32 to vector<8x1xf32>
    %170 = arith.addf %166, %169 : vector<8x1xf32>
    %171 = math.rsqrt %170 : vector<8x1xf32>
    %172 = vector.broadcast %171 : vector<8x1xf32> to vector<8x32xf32>
    %173 = arith.mulf %168, %172 : vector<8x32xf32>
    %c0_63 = arith.constant 0 : index
    %c0_64 = arith.constant 0 : index
    %174 = vector.load %arg6[%c0_63, %c0_64] : memref<1x32xf32, #tpu.memory_space<vmem>>, vector<1x32xf32>
    %175 = vector.broadcast %174 : vector<1x32xf32> to vector<8x32xf32>
    %176 = arith.mulf %173, %175 : vector<8x32xf32>
    %c0_65 = arith.constant 0 : index
    %c0_66 = arith.constant 0 : index
    %177 = vector.load %arg7[%c0_65, %c0_66] : memref<1x32xf32, #tpu.memory_space<vmem>>, vector<1x32xf32>
    %178 = vector.broadcast %177 : vector<1x32xf32> to vector<8x32xf32>
    %179 = arith.addf %176, %178 : vector<8x32xf32>
    %c0_67 = arith.constant 0 : index
    %c0_68 = arith.constant 0 : index
    %180 = vector.load %arg24[%c0_67, %c0_68] : memref<32x64xf32, #tpu.memory_space<vmem>>, vector<32x64xf32>
    %cst_69 = arith.constant dense<0.000000e+00> : vector<8x64xf32>
    %181 = tpu.matmul %179, %180, %cst_69 {dimension_numbers = #tpu.dot_dimension_numbers<[1], [0], [0], [1], [0, 0, 1, 1], [], []>} : vector<8x32xf32>, vector<32x64xf32>, vector<8x64xf32> -> vector<8x64xf32>
    %c0_70 = arith.constant 0 : index
    %c0_71 = arith.constant 0 : index
    %182 = vector.load %arg25[%c0_70, %c0_71] : memref<1x64xf32, #tpu.memory_space<vmem>>, vector<1x64xf32>
    %183 = vector.broadcast %182 : vector<1x64xf32> to vector<8x64xf32>
    %184 = arith.addf %181, %183 : vector<8x64xf32>
    %cst_72 = arith.constant 0.000000e+00 : f32
    %185 = vector.broadcast %cst_72 : f32 to vector<8x64xf32>
    %186 = arith.maximumf %184, %185 : vector<8x64xf32>
    %c0_73 = arith.constant 0 : index
    %c0_74 = arith.constant 0 : index
    %187 = vector.load %arg26[%c0_73, %c0_74] : memref<64x32xf32, #tpu.memory_space<vmem>>, vector<64x32xf32>
    %cst_75 = arith.constant dense<0.000000e+00> : vector<8x32xf32>
    %188 = tpu.matmul %186, %187, %cst_75 {dimension_numbers = #tpu.dot_dimension_numbers<[1], [0], [0], [1], [0, 0, 1, 1], [], []>} : vector<8x64xf32>, vector<64x32xf32>, vector<8x32xf32> -> vector<8x32xf32>
    %c0_76 = arith.constant 0 : index
    %c0_77 = arith.constant 0 : index
    %189 = vector.load %arg27[%c0_76, %c0_77] : memref<1x32xf32, #tpu.memory_space<vmem>>, vector<1x32xf32>
    %190 = vector.broadcast %189 : vector<1x32xf32> to vector<8x32xf32>
    %191 = arith.addf %188, %190 : vector<8x32xf32>
    %c0_78 = arith.constant 0 : index
    %c0_79 = arith.constant 0 : index
    %192 = vector.load %arg18[%c0_78, %c0_79] : memref<32x96xf32, #tpu.memory_space<vmem>>, vector<32x96xf32>
    %cst_80 = arith.constant dense<0.000000e+00> : vector<8x96xf32>
    %193 = tpu.matmul %191, %192, %cst_80 {dimension_numbers = #tpu.dot_dimension_numbers<[1], [0], [0], [1], [0, 0, 1, 1], [], []>} : vector<8x32xf32>, vector<32x96xf32>, vector<8x96xf32> -> vector<8x96xf32>
    %c0_81 = arith.constant 0 : index
    %c0_82 = arith.constant 0 : index
    %194 = vector.load %arg19[%c0_81, %c0_82] : memref<1x96xf32, #tpu.memory_space<vmem>>, vector<1x96xf32>
    %195 = vector.broadcast %194 : vector<1x96xf32> to vector<8x96xf32>
    %196 = arith.addf %193, %195 : vector<8x96xf32>
    %c0_83 = arith.constant 0 : index
    %c0_84 = arith.constant 0 : index
    %197 = vector.load %arg20[%c0_83, %c0_84] : memref<32x64xf32, #tpu.memory_space<vmem>>, vector<32x64xf32>
    %cst_85 = arith.constant dense<0.000000e+00> : vector<8x64xf32>
    %198 = tpu.matmul %155, %197, %cst_85 {dimension_numbers = #tpu.dot_dimension_numbers<[1], [0], [0], [1], [0, 0, 1, 1], [], []>} : vector<8x32xf32>, vector<32x64xf32>, vector<8x64xf32> -> vector<8x64xf32>
    %c0_86 = arith.constant 0 : index
    %c0_87 = arith.constant 0 : index
    %199 = vector.load %arg21[%c0_86, %c0_87] : memref<1x64xf32, #tpu.memory_space<vmem>>, vector<1x64xf32>
    %200 = vector.broadcast %199 : vector<1x64xf32> to vector<8x64xf32>
    %201 = arith.addf %198, %200 : vector<8x64xf32>
    %202 = vector.extract_strided_slice %196 {offsets = [0, 0], sizes = [8, 32], strides = [1, 1]} : vector<8x96xf32> to vector<8x32xf32>
    %203 = vector.extract_strided_slice %201 {offsets = [0, 0], sizes = [8, 32], strides = [1, 1]} : vector<8x64xf32> to vector<8x32xf32>
    %204 = arith.addf %202, %203 : vector<8x32xf32>
    %205 = arith.negf %204 : vector<8x32xf32>
    %206 = math.exp %205 : vector<8x32xf32>
    %cst_88 = arith.constant 1.000000e+00 : f32
    %207 = vector.broadcast %cst_88 : f32 to vector<8x32xf32>
    %208 = arith.addf %207, %206 : vector<8x32xf32>
    %209 = arith.divf %207, %208 : vector<8x32xf32>
    %210 = vector.extract_strided_slice %196 {offsets = [0, 32], sizes = [8, 32], strides = [1, 1]} : vector<8x96xf32> to vector<8x32xf32>
    %211 = vector.extract_strided_slice %201 {offsets = [0, 32], sizes = [8, 32], strides = [1, 1]} : vector<8x64xf32> to vector<8x32xf32>
    %212 = arith.addf %210, %211 : vector<8x32xf32>
    %cst_89 = arith.constant 1.000000e-01 : f32
    %213 = vector.broadcast %cst_89 : f32 to vector<8x32xf32>
    %214 = arith.subf %212, %213 : vector<8x32xf32>
    %215 = arith.negf %214 : vector<8x32xf32>
    %216 = math.exp %215 : vector<8x32xf32>
    %cst_90 = arith.constant 1.000000e+00 : f32
    %217 = vector.broadcast %cst_90 : f32 to vector<8x32xf32>
    %218 = arith.addf %217, %216 : vector<8x32xf32>
    %219 = arith.divf %217, %218 : vector<8x32xf32>
    %220 = vector.extract_strided_slice %196 {offsets = [0, 64], sizes = [8, 32], strides = [1, 1]} : vector<8x96xf32> to vector<8x32xf32>
    %221 = arith.mulf %209, %155 : vector<8x32xf32>
    %c0_91 = arith.constant 0 : index
    %c0_92 = arith.constant 0 : index
    %222 = vector.load %arg22[%c0_91, %c0_92] : memref<32x32xf32, #tpu.memory_space<vmem>>, vector<32x32xf32>
    %cst_93 = arith.constant dense<0.000000e+00> : vector<8x32xf32>
    %223 = tpu.matmul %221, %222, %cst_93 {dimension_numbers = #tpu.dot_dimension_numbers<[1], [0], [0], [1], [0, 0, 1, 1], [], []>} : vector<8x32xf32>, vector<32x32xf32>, vector<8x32xf32> -> vector<8x32xf32>
    %224 = arith.addf %220, %223 : vector<8x32xf32>
    %c0_94 = arith.constant 0 : index
    %c0_95 = arith.constant 0 : index
    %225 = vector.load %arg23[%c0_94, %c0_95] : memref<1x32xf32, #tpu.memory_space<vmem>>, vector<1x32xf32>
    %226 = vector.broadcast %225 : vector<1x32xf32> to vector<8x32xf32>
    %227 = arith.addf %224, %226 : vector<8x32xf32>
    %228 = math.tanh %227 : vector<8x32xf32>
    %cst_96 = arith.constant 1.000000e+00 : f32
    %229 = vector.broadcast %cst_96 : f32 to vector<8x32xf32>
    %230 = arith.subf %229, %219 : vector<8x32xf32>
    %231 = arith.mulf %230, %155 : vector<8x32xf32>
    %232 = arith.mulf %219, %228 : vector<8x32xf32>
    %233 = arith.addf %231, %232 : vector<8x32xf32>
    %234 = tpu.concatenate %1, %0 in 0 : vector<6x32xf32>, vector<8x32xf32> -> vector<14x32xf32>
    %235 = vector.extract_strided_slice %234 {offsets = [8, 0], sizes = [6, 32], strides = [1, 1]} : vector<14x32xf32> to vector<6x32xf32>
    %c0_97 = arith.constant 0 : index
    %c0_98 = arith.constant 0 : index
    %236 = vector.load %arg37[%c0_97, %c0_98] : memref<6x32xf32, #tpu.memory_space<vmem>>, vector<6x32xf32>
    tpu.vector_store %arg37[%c0_97, %c0_98], %235 {strides = array<i32>} : memref<6x32xf32, #tpu.memory_space<vmem>>, vector<6x32xf32>,
    %c0_99 = arith.constant 0 : index
    %c0_100 = arith.constant 0 : index
    %237 = vector.load %arg2[%c0_99, %c0_100] : memref<6x32xf32, #tpu.memory_space<vmem>>, vector<6x32xf32>
    %238 = tpu.concatenate %237, %233 in 0 : vector<6x32xf32>, vector<8x32xf32> -> vector<14x32xf32>
    %239 = vector.extract_strided_slice %238 {offsets = [8, 0], sizes = [6, 32], strides = [1, 1]} : vector<14x32xf32> to vector<6x32xf32>
    %c0_101 = arith.constant 0 : index
    %c0_102 = arith.constant 0 : index
    %240 = vector.load %arg38[%c0_101, %c0_102] : memref<6x32xf32, #tpu.memory_space<vmem>>, vector<6x32xf32>
    tpu.vector_store %arg38[%c0_101, %c0_102], %239 {strides = array<i32>} : memref<6x32xf32, #tpu.memory_space<vmem>>, vector<6x32xf32>,
    %cst_103 = arith.constant dense<0.000000e+00> : vector<32xf32>
    %241 = vector.multi_reduction <add>, %233, %cst_103 [0] : vector<8x32xf32> to vector<32xf32>
    %242 = vector.shape_cast %241 : vector<32xf32> to vector<1x32xf32>
    %cst_104 = arith.constant 8.000000e+00 : f32
    %243 = vector.broadcast %cst_104 : f32 to vector<1x32xf32>
    %244 = arith.divf %242, %243 : vector<1x32xf32>
    %c0_105 = arith.constant 0 : index
    %c0_106 = arith.constant 0 : index
    %245 = vector.load %arg28[%c0_105, %c0_106] : memref<32x512xf32, #tpu.memory_space<vmem>>, vector<32x512xf32>
    %cst_107 = arith.constant dense<0.000000e+00> : vector<1x512xf32>
    %246 = tpu.matmul %244, %245, %cst_107 {dimension_numbers = #tpu.dot_dimension_numbers<[1], [0], [0], [1], [0, 0, 1, 1], [], []>} : vector<1x32xf32>, vector<32x512xf32>, vector<1x512xf32> -> vector<1x512xf32>
    %c0_108 = arith.constant 0 : index
    %c0_109 = arith.constant 0 : index
    %247 = vector.load %arg29[%c0_108, %c0_109] : memref<1x512xf32, #tpu.memory_space<vmem>>, vector<1x512xf32>
    %248 = arith.addf %246, %247 : vector<1x512xf32>
    %cst_110 = arith.constant 0.000000e+00 : f32
    %249 = vector.broadcast %cst_110 : f32 to vector<1x512xf32>
    %250 = arith.maximumf %248, %249 : vector<1x512xf32>
    %c0_111 = arith.constant 0 : index
    %c0_112 = arith.constant 0 : index
    %251 = vector.load %arg30[%c0_111, %c0_112] : memref<512x128xf32, #tpu.memory_space<vmem>>, vector<512x128xf32>
    %cst_113 = arith.constant dense<0.000000e+00> : vector<1x128xf32>
    %252 = tpu.matmul %250, %251, %cst_113 {dimension_numbers = #tpu.dot_dimension_numbers<[1], [0], [0], [1], [0, 0, 1, 1], [], []>} : vector<1x512xf32>, vector<512x128xf32>, vector<1x128xf32> -> vector<1x128xf32>
    %c0_114 = arith.constant 0 : index
    %c0_115 = arith.constant 0 : index
    %253 = vector.load %arg31[%c0_114, %c0_115] : memref<1x128xf32, #tpu.memory_space<vmem>>, vector<1x128xf32>
    %254 = arith.addf %252, %253 : vector<1x128xf32>
    %cst_116 = arith.constant 0.000000e+00 : f32
    %255 = vector.broadcast %cst_116 : f32 to vector<1x128xf32>
    %256 = arith.maximumf %254, %255 : vector<1x128xf32>
    %c0_117 = arith.constant 0 : index
    %c0_118 = arith.constant 0 : index
    %257 = vector.load %arg32[%c0_117, %c0_118] : memref<128x128xf32, #tpu.memory_space<vmem>>, vector<128x128xf32>
    %cst_119 = arith.constant dense<0.000000e+00> : vector<1x128xf32>
    %258 = tpu.matmul %256, %257, %cst_119 {dimension_numbers = #tpu.dot_dimension_numbers<[1], [0], [0], [1], [0, 0, 1, 1], [], []>} : vector<1x128xf32>, vector<128x128xf32>, vector<1x128xf32> -> vector<1x128xf32>
    %c0_120 = arith.constant 0 : index
    %c0_121 = arith.constant 0 : index
    %259 = vector.load %arg33[%c0_120, %c0_121] : memref<1x128xf32, #tpu.memory_space<vmem>>, vector<1x128xf32>
    %260 = arith.addf %258, %259 : vector<1x128xf32>
    %cst_122 = arith.constant 0.000000e+00 : f32
    %261 = vector.broadcast %cst_122 : f32 to vector<1x128xf32>
    %262 = arith.maximumf %260, %261 : vector<1x128xf32>
    %c0_123 = arith.constant 0 : index
    %c0_124 = arith.constant 0 : index
    %263 = vector.load %arg34[%c0_123, %c0_124] : memref<128x8xf32, #tpu.memory_space<vmem>>, vector<128x8xf32>
    %cst_125 = arith.constant dense<0.000000e+00> : vector<1x8xf32>
    %264 = tpu.matmul %262, %263, %cst_125 {dimension_numbers = #tpu.dot_dimension_numbers<[1], [0], [0], [1], [0, 0, 1, 1], [], []>} : vector<1x128xf32>, vector<128x8xf32>, vector<1x8xf32> -> vector<1x8xf32>
    %c0_126 = arith.constant 0 : index
    %c0_127 = arith.constant 0 : index
    %265 = vector.load %arg35[%c0_126, %c0_127] : memref<1x8xf32, #tpu.memory_space<vmem>>, vector<1x8xf32>
    %266 = arith.addf %264, %265 : vector<1x8xf32>
    %cst_128 = arith.constant 0.000000e+00 : f32
    %267 = vector.broadcast %cst_128 : f32 to vector<1x8xf32>
    %268 = arith.maximumf %266, %267 : vector<1x8xf32>
    %c0_129 = arith.constant 0 : index
    %c0_130 = arith.constant 0 : index
    %269 = vector.load %arg36[%c0_129, %c0_130] : memref<1x8xf32, #tpu.memory_space<vmem>>, vector<1x8xf32>
    tpu.vector_store %arg36[%c0_129, %c0_130], %268 {strides = array<i32>} : memref<1x8xf32, #tpu.memory_space<vmem>>, vector<1x8xf32>,
    return
  }
}

</mosaic_0001>

<bundles_post_ra>
// kernel: tpu_custom_call.1
= control target key start
LH: loop header
LB: loop body
LE: loop exit
PB: predicated region body
PF: predicated region fallthrough
CT: control target
= control target key end

     0   :  { %s3873_s6 = smov 1   ;;  %s3874_s10 = smov 2   ;;  %s4590_s0 = inlined_call_operand.smem [shape: u32[39], index: -1, kind: input, shape index: {}] }
   0x1   :  { %s3959_s5 = sld [smem:[%s4590_s0]]   ;;  %s3875_s14 = smov 3  }
   0x2   :  { %s3964_s9 = sld [smem:[%s4590_s0 + %s3873_s6]]   ;;  %s3876_s18 = smov 4  }
   0x3   :  { %s3969_s13 = sld [smem:[%s4590_s0 + %s3874_s10]]   ;;  %s3877_s22 = smov 5  }
   0x4   :  { %s3974_s17 = sld [smem:[%s4590_s0 + %s3875_s14]]   ;;  %s3878_s26 = smov 6  }
   0x5   :  { %s3979_s21 = sld [smem:[%s4590_s0 + %s3876_s18]]   ;;  %s3879_s30 = smov 7  }
   0x6   :  { %s3984_s25 = sld [smem:[%s4590_s0 + %s3877_s22]]   ;;  %s3880_s4 = smov 8  }
   0x7   :  { %s3989_s29 = sld [smem:[%s4590_s0 + %s3878_s26]]   ;;  %s3881_s10 = smov 9  }
   0x8   :  { %s3994_s3 = sld [smem:[%s4590_s0 + %s3879_s30]]   ;;  %s3882_s15 = smov 10  }
   0x9   :  { %s3999_s8 = sld [smem:[%s4590_s0 + %s3880_s4]]   ;;  %s3883_s20 = smov 11  }
   0xa   :  { %s4004_s14 = sld [smem:[%s4590_s0 + %s3881_s10]]   ;;  %s3884_s26 = smov 12  }
   0xb   :  { %s4009_s19 = sld [smem:[%s4590_s0 + %s3882_s15]]   ;;  %s3885_s1 = smov 13  }
   0xc   :  { %s4014_s24 = sld [smem:[%s4590_s0 + %s3883_s20]]   ;;  %s3886_s7 = smov 14  }
   0xd   :  { %s4019_s30 = sld [smem:[%s4590_s0 + %s3884_s26]]   ;;  %s3887_s15 = smov 15  }
   0xe   :  { %s4024_s6 = sld [smem:[%s4590_s0 + %s3885_s1]]   ;;  %s3888_s22 = smov 16  }
   0xf   :  { %4597 = sst [smem:[#allocation55_spill]] %s3999_s8  ;;  %s3889_s28 = smov 17  }
  0x10   :  { %4598 = sst [smem:[#allocation56_spill]] %s4004_s14 }
  0x11   :  { %s4029_s12 = sld [smem:[%s4590_s0 + %s3886_s7]]   ;;  %s3890_s7 = smov 18  }
  0x12   :  { %4599 = sst [smem:[#allocation57_spill]] %s4014_s24 }
  0x13   :  { %4600 = sst [smem:[#allocation58_spill]] %s4019_s30 }
  0x14   :  { %s4034_s20 = sld [smem:[%s4590_s0 + %s3887_s15]]   ;;  %s3891_s15 = smov 19  }
  0x15   :  { %s4039_s27 = sld [smem:[%s4590_s0 + %s3888_s22]]   ;;  %s3892_s22 = smov 20  }
  0x16   :  { %s4044_s4 = sld [smem:[%s4590_s0 + %s3889_s28]]   ;;  %s3893_s28 = smov 21  }
  0x17   :  { %4601 = sst [smem:[#allocation59_spill]] %s4029_s12 }
  0x18   :  { %s4049_s24 = sld [smem:[%s4590_s0 + %s3890_s7]]   ;;  %s3894_s7 = smov 22  }
  0x19   :  { %s4054_s8 = sld [smem:[%s4590_s0 + %s3891_s15]]   ;;  %s3895_s15 = smov 23  }
  0x1a   :  { %s4064_s12 = sld [smem:[%s4590_s0 + %s3893_s28]]   ;;  %s3897_s28 = smov 25  }
  0x1b   :  { %4602 = sst [smem:[#allocation60_spill]] %s4039_s27 }
  0x1c   :  { %s4059_s27 = sld [smem:[%s4590_s0 + %s3892_s22]]   ;;  %s3896_s22 = smov 24  }
  0x1d   :  { %s4074_s30 = sld [smem:[%s4590_s0 + %s3895_s15]]   ;;  %s3899_s15 = smov 27  }
  0x1e   :  { %4603 = sst [smem:[#allocation61_spill]] %s4049_s24 }
  0x1f   :  { %s4069_s24 = sld [smem:[%s4590_s0 + %s3894_s7]]   ;;  %s3898_s7 = smov 26  }
  0x20   :  { %4605 = sst [smem:[#allocation63_spill]] %s4064_s12 }
  0x21   :  { %s4084_s12 = sld [smem:[%s4590_s0 + %s3897_s28]]   ;;  %s3901_s28 = smov 29  }
  0x22   :  { %4604 = sst [smem:[#allocation62_spill]] %s4059_s27 }
  0x23   :  { %4606 = sst [smem:[#allocation64_spill]] %s4074_s30 }
  0x24   :  { %s4079_s27 = sld [smem:[%s4590_s0 + %s3896_s22]]   ;;  %s3900_s22 = smov 28  }
  0x25   :  { %s4089_s14 = sld [smem:[%s4590_s0 + %s3898_s7]]   ;;  %s3902_s7 = smov 30  }
  0x26   :  { %s4094_s30 = sld [smem:[%s4590_s0 + %s3899_s15]]   ;;  %s3903_s15 = smov 31  }
  0x27   :  { %4608 = sst [smem:[#allocation66_spill]] %s4084_s12 }
  0x28   :  { %s4104_s12 = sld [smem:[%s4590_s0 + %s3901_s28]]   ;;  %s3905_s28 = smov 33  }
  0x2a   :  { %4607 = sst [smem:[#allocation65_spill]] %s4079_s27 }
  0x2b   :  { %4609 = sst [smem:[#allocation67_spill]] %s4089_s14 }
  0x2c   :  { %4610 = sst [smem:[#allocation68_spill]] %s4094_s30 }
  0x2d   :  { %s4099_s27 = sld [smem:[%s4590_s0 + %s3900_s22]]   ;;  %s3904_s22 = smov 32  }
  0x2e   :  { %4612 = sst [smem:[#allocation70_spill]] %s4104_s12 }
  0x2f   :  { %s4109_s14 = sld [smem:[%s4590_s0 + %s3902_s7]]   ;;  %s3906_s7 = smov 34  }
  0x30   :  { %s4114_s30 = sld [smem:[%s4590_s0 + %s3903_s15]]   ;;  %s3907_s15 = smov 35  }
  0x31   :  { %s4124_s12 = sld [smem:[%s4590_s0 + %s3905_s28]]   ;;  %s3909_s28 = smov 37  }
  0x33   :  { %4611 = sst [smem:[#allocation69_spill]] %s4099_s27 }
  0x34   :  { %s4119_s27 = sld [smem:[%s4590_s0 + %s3904_s22]]   ;;  %s3908_s22 = smov 36  }
  0x35   :  { %4613 = sst [smem:[#allocation71_spill]] %s4109_s14 }
  0x36   :  { %4614 = sst [smem:[#allocation72_spill]] %s4114_s30 }
  0x37   :  { %4616 = sst [smem:[#allocation74_spill]] %s4124_s12 }
  0x38   :  { %s4129_s14 = sld [smem:[%s4590_s0 + %s3906_s7]]   ;;  %s3910_s7 = smov 38  }
  0x39   :  { %s4134_s30 = sld [smem:[%s4590_s0 + %s3907_s15]]  }
  0x3a   :  { %4615 = sst [smem:[#allocation73_spill]] %s4119_s27 }
  0x3b   :  { %s4139_s27 = sld [smem:[%s4590_s0 + %s3908_s22]]  }
  0x3c   :  { %s4144_s12 = sld [smem:[%s4590_s0 + %s3909_s28]]  }
  0x3e   :  { %4617 = sst [smem:[#allocation75_spill]] %s4129_s14 }
  0x3f   :  { %s4149_s14 = sld [smem:[%s4590_s0 + %s3910_s7]]  }
  0x40   :  { %83 = vsyncpa [#allocation3], 0 }
  0x41   :  { %84 = vsyncpa [#allocation6], 0 }
  0x42   :  { %85 = vsyncpa [#allocation9], 0 }
  0x43   :  { %86 = vsyncpa [#allocation12], 0 }
  0x44   :  { %87 = vsyncpa [#allocation15], 0 }
  0x45   :  { %88 = vsyncpa [#allocation18], 0 }
  0x46   :  { %89 = vsyncpa [#allocation21], 0 }
  0x47   :  { %90 = vsyncpa [#allocation24], 0 }
  0x48   :  { %91 = vsyncpa [#allocation27], 0 }
  0x49   :  { %92 = vsyncpa [#allocation30], 0 }
  0x4a   :  { %93 = vsyncpa [#allocation33], 0 }
  0x4b   :  { %94 = vsyncpa [#allocation36], 0 }
  0x4c   :  { %95 = vsyncpa [#allocation4], 0 }
  0x4d   :  { %96 = vsyncpa [#allocation39], 0  ;;  %s3911_s15 = smov [#allocation5]   ;;  %s3912_s18 = smov [#allocation8]  }
  0x4e   :  { %s113_s16 = sshll.u32 %s3911_s15, 4  ;;  %s132_s22 = sshll.u32 %s3912_s18, 4  ;;  %s114_s16 = int_to_ptr.vmem [resolvable:$true] %s113_s16  ;;  %s133_s22 = int_to_ptr.vmem [resolvable:$true] %s132_s22 }
  0x4f   :  { %s3353_s0 = scalar_lea.vmem %s114_s16, 128  ;;  %p3358_p1 = scmp.lt.s32.totalorder %s114_s16, %s114_s16 }
  0x50   :  { %p3354_p0 = scmp.ne.s32.totalorder %s114_s16, %s3353_s0  ;;  %p3359_p2 = scmp.lt.s32.totalorder %s3353_s0, %s3353_s0 }
  0x52   :  { %p3360_p3 = por %p3359_p2, %p3358_p1 }
  0x54   :  { %p3361_p4 = pnand %p3360_p3, %p3354_p0 }
  0x56   :  { %3364 = shalt.err (!%p3361_p4)
}
  0x57   :  { %116 = dma.hbm_to_vmem [thread:$0]  %s3964_s9, 128, %s114_s16, [#allocation6]  }
  0x58   :  { %s3373_s23 = scalar_lea.vmem %s133_s22, 256  ;;  %p3378_p6 = scmp.lt.s32.totalorder %s133_s22, %s133_s22 }
  0x59   :  { %p3374_p5 = scmp.ne.s32.totalorder %s133_s22, %s3373_s23  ;;  %p3379_p7 = scmp.lt.s32.totalorder %s3373_s23, %s3373_s23 }
  0x5b   :  { %p3380_p8 = por %p3379_p7, %p3378_p6 }
  0x5d   :  { %p3381_p9 = pnand %p3380_p8, %p3374_p5 }
  0x5f   :  { %3384 = shalt.err (!%p3381_p9)
}
  0x60   :  { %s3913_s26 = smov 128   ;;  %s3914_s28 = smov 8  }
  0x61   :  { %138 = dma.hbm_to_vmem [thread:$0]  %s3974_s17, 256, %s133_s22, [#allocation9], %s3913_s26, %s3913_s26, %s3914_s28  }
  0x62   :  { %s3915_s1 = smov [#allocation11]   ;;  %s3916_s7 = smov [#allocation14]  }
  0x63   :  { %s155_s2 = sshll.u32 %s3915_s1, 4  ;;  %s175_s10 = sshll.u32 %s3916_s7, 4  ;;  %s156_s2 = int_to_ptr.vmem [resolvable:$true] %s155_s2  ;;  %s176_s10 = int_to_ptr.vmem [resolvable:$true] %s175_s10 }
  0x64   :  { %s3393_s9 = scalar_lea.vmem %s156_s2, 16  ;;  %s3397_s11 = scalar_lea.vmem %s156_s2, 32 }
  0x65   :  { %p3394_p10 = scmp.ne.s32.totalorder %s156_s2, %s3393_s9  ;;  %p3398_p11 = scmp.lt.s32.totalorder %s156_s2, %s156_s2 }
  0x66   :  { %p3399_p12 = scmp.lt.s32.totalorder %s3397_s11, %s3393_s9 }
  0x68   :  { %p3400_p13 = por %p3399_p12, %p3398_p11 }
  0x6a   :  { %p3401_p0 = pnand %p3400_p13, %p3394_p10 }
  0x6c   :  { %3404 = shalt.err (!%p3401_p0)
}
  0x6d   :  { %158 = dma.hbm_to_vmem [thread:$0]  %s3984_s25, 16, %s156_s2, [#allocation12]  }
  0x6e   :  { %s3413_s15 = scalar_lea.vmem %s176_s10, 16  ;;  %s3417_s16 = scalar_lea.vmem %s176_s10, 32 }
  0x6f   :  { %p3414_p1 = scmp.ne.s32.totalorder %s176_s10, %s3413_s15  ;;  %p3418_p2 = scmp.lt.s32.totalorder %s176_s10, %s176_s10 }
  0x70   :  { %p3419_p3 = scmp.lt.s32.totalorder %s3417_s16, %s3413_s15 }
  0x72   :  { %p3420_p4 = por %p3419_p3, %p3418_p2 }
  0x74   :  { %p3421_p5 = pnand %p3420_p4, %p3414_p1 }
  0x76   :  { %3424 = shalt.err (!%p3421_p5)
}
  0x77   :  { %178 = dma.hbm_to_vmem [thread:$0]  %s3994_s3, 16, %s176_s10, [#allocation15]  }
  0x78   :  { %s3917_s17 = smov [#allocation17]   ;;  %s3918_s22 = smov [#allocation20]  }
  0x79   :  { %s197_s18 = sshll.u32 %s3917_s17, 4  ;;  %s221_s0 = sshll.u32 %s3918_s22, 4  ;;  %s198_s18 = int_to_ptr.vmem [resolvable:$true] %s197_s18  ;;  %s222_s0 = int_to_ptr.vmem [resolvable:$true] %s221_s0 }
  0x7a   :  { %s3433_s23 = scalar_lea.vmem %s198_s18, 16  ;;  %s3437_s1 = scalar_lea.vmem %s198_s18, 32 }
  0x7b   :  { %p3434_p6 = scmp.ne.s32.totalorder %s198_s18, %s3433_s23  ;;  %p3438_p7 = scmp.lt.s32.totalorder %s198_s18, %s198_s18 }
  0x7c   :  { %p3439_p8 = scmp.lt.s32.totalorder %s3437_s1, %s3433_s23 }
  0x7e   :  { %p3440_p9 = por %p3439_p8, %p3438_p7 }
  0x80   :  { %p3441_p10 = pnand %p3440_p9, %p3434_p6 }
  0x82   :  { %3444 = shalt.err (!%p3441_p10)
}
  0x83   :  { %200 = dma.hbm_to_vmem [thread:$0]  %s4009_s19, 16, %s198_s18, [#allocation18]  }
  0x84   :  { %s3453_s25 = scalar_lea.vmem %s222_s0, 16  ;;  %s3457_s2 = scalar_lea.vmem %s222_s0, 32 }
  0x85   :  { %p3454_p11 = scmp.ne.s32.totalorder %s222_s0, %s3453_s25  ;;  %p3458_p12 = scmp.lt.s32.totalorder %s222_s0, %s222_s0 }
  0x86   :  { %p3459_p13 = scmp.lt.s32.totalorder %s3457_s2, %s3453_s25 }
  0x88   :  { %p3460_p0 = por %p3459_p13, %p3458_p12 }
  0x8a   :  { %p3461_p1 = pnand %p3460_p0, %p3454_p11 }
  0x8c   :  { %3464 = shalt.err (!%p3461_p1)
}
  0x8d   :  { %224 = dma.hbm_to_vmem [thread:$0]  %s4024_s6, 16, %s222_s0, [#allocation21]  }
  0x8e   :  { %s3919_s3 = smov [#allocation23]   ;;  %s3920_s10 = smov [#allocation26]  }
  0x8f   :  { %s243_s7 = sshll.u32 %s3919_s3, 4  ;;  %s265_s9 = sshll.u32 %s3920_s10, 4  ;;  %s244_s7 = int_to_ptr.vmem [resolvable:$true] %s243_s7  ;;  %s266_s9 = int_to_ptr.vmem [resolvable:$true] %s265_s9 }
  0x90   :  { %s3473_s11 = scalar_lea.vmem %s244_s7, 16  ;;  %s3477_s15 = scalar_lea.vmem %s244_s7, 32 }
  0x91   :  { %p3474_p2 = scmp.ne.s32.totalorder %s244_s7, %s3473_s11  ;;  %p3478_p3 = scmp.lt.s32.totalorder %s244_s7, %s244_s7 }
  0x92   :  { %p3479_p4 = scmp.lt.s32.totalorder %s3477_s15, %s3473_s11 }
  0x94   :  { %p3480_p5 = por %p3479_p4, %p3478_p3 }
  0x96   :  { %p3481_p6 = pnand %p3480_p5, %p3474_p2 }
  0x98   :  { %3484 = shalt.err (!%p3481_p6)
}
  0x99   :  { %246 = dma.hbm_to_vmem [thread:$0]  %s4034_s20, 16, %s244_s7, [#allocation24]  }
  0x9a   :  { %s3493_s19 = scalar_lea.vmem %s266_s9, 16  ;;  %s3497_s16 = scalar_lea.vmem %s266_s9, 32 }
  0x9b   :  { %p3494_p7 = scmp.ne.s32.totalorder %s266_s9, %s3493_s19  ;;  %p3498_p8 = scmp.lt.s32.totalorder %s266_s9, %s266_s9 }
  0x9c   :  { %p3499_p9 = scmp.lt.s32.totalorder %s3497_s16, %s3493_s19 }
  0x9e   :  { %p3500_p10 = por %p3499_p9, %p3498_p8 }
  0xa0   :  { %p3501_p11 = pnand %p3500_p10, %p3494_p7 }
  0xa2   :  { %3504 = shalt.err (!%p3501_p11)
}
  0xa3   :  { %268 = dma.hbm_to_vmem [thread:$0]  %s4044_s4, 16, %s266_s9, [#allocation27]  }
  0xa4   :  { %s3921_s6 = smov [#allocation29]   ;;  %s3922_s18 = smov [#allocation32]  }
  0xa5   :  { %s287_s17 = sshll.u32 %s3921_s6, 4  ;;  %s310_s22 = sshll.u32 %s3922_s18, 4  ;;  %s288_s17 = int_to_ptr.vmem [resolvable:$true] %s287_s17  ;;  %s311_s22 = int_to_ptr.vmem [resolvable:$true] %s310_s22 }
  0xa6   :  { %s3513_s0 = scalar_lea.vmem %s288_s17, 16  ;;  %s3517_s23 = scalar_lea.vmem %s288_s17, 32 }
  0xa7   :  { %p3514_p12 = scmp.ne.s32.totalorder %s288_s17, %s3513_s0  ;;  %p3518_p13 = scmp.lt.s32.totalorder %s288_s17, %s288_s17 }
  0xa8   :  { %p3519_p0 = scmp.lt.s32.totalorder %s3517_s23, %s3513_s0 }
  0xaa   :  { %p3520_p1 = por %p3519_p0, %p3518_p13 }
  0xac   :  { %p3521_p2 = pnand %p3520_p1, %p3514_p12 }
  0xae   :  { %3524 = shalt.err (!%p3521_p2)
}
  0xaf   :  { %290 = dma.hbm_to_vmem [thread:$0]  %s4054_s8, 16, %s288_s17, [#allocation30]  }
  0xb0   :  { %s3533_s20 = scalar_lea.vmem %s311_s22, 512  ;;  %p3538_p4 = scmp.lt.s32.totalorder %s311_s22, %s311_s22 }
  0xb1   :  { %p3534_p3 = scmp.ne.s32.totalorder %s311_s22, %s3533_s20  ;;  %p3539_p5 = scmp.lt.s32.totalorder %s3533_s20, %s3533_s20 }
  0xb3   :  { %p3540_p6 = por %p3539_p5, %p3538_p4 }
  0xb5   :  { %p3541_p7 = pnand %p3540_p6, %p3534_p3 }
  0xb7   :  { %3544 = shalt.err (!%p3541_p7)
}
  0xb8   :  { %316 = dma.hbm_to_vmem [thread:$0]  %s4069_s24, 512, %s311_s22, [#allocation33], %s3913_s26, %s3913_s26, %s3914_s28  }
  0xb9   :  { %s3923_s4 = smov [#allocation2]   ;;  %s3924_s25 = smov [#allocation7]  }
  0xba   :  { %s103_s1 = sshll.u32 %s3923_s4, 4  ;;  %s123_s2 = sshll.u32 %s3924_s25, 4  ;;  %s104_s1 = int_to_ptr.vmem [resolvable:$true] %s103_s1  ;;  %s124_s2 = int_to_ptr.vmem [resolvable:$true] %s123_s2 }
  0xbb   :  { %s3553_s3 = scalar_lea.vmem %s104_s1, 128  ;;  %p3558_p9 = scmp.lt.s32.totalorder %s104_s1, %s104_s1 }
  0xbc   :  { %p3554_p8 = scmp.ne.s32.totalorder %s104_s1, %s3553_s3  ;;  %p3559_p10 = scmp.lt.s32.totalorder %s3553_s3, %s3553_s3 }
  0xbe   :  { %p3560_p11 = por %p3559_p10, %p3558_p9 }
  0xc0   :  { %p3561_p12 = pnand %p3560_p11, %p3554_p8 }
  0xc2   :  { %3564 = shalt.err (!%p3561_p12)
}
  0xc3   :  { %106 = dma.hbm_to_vmem [thread:$0]  %s3959_s5, 128, %s104_s1, [#allocation3]  }
  0xc4   :  { %s3573_s8 = scalar_lea.vmem %s124_s2, 128  ;;  %p3578_p0 = scmp.lt.s32.totalorder %s124_s2, %s124_s2 }
  0xc5   :  { %p3574_p13 = scmp.ne.s32.totalorder %s124_s2, %s3573_s8  ;;  %p3579_p1 = scmp.lt.s32.totalorder %s3573_s8, %s3573_s8 }
  0xc7   :  { %p3580_p2 = por %p3579_p1, %p3578_p0 }
  0xc9   :  { %p3581_p3 = pnand %p3580_p2, %p3574_p13 }
  0xcb   :  { %3584 = shalt.err (!%p3581_p3)
}
  0xcc   :  { %126 = dma.hbm_to_vmem [thread:$0]  %s3969_s13, 128, %s124_s2, [#allocation6]  }
  0xcd   :  { %s3925_s24 = smov [#allocation10]   ;;  %s3926_s10 = smov [#allocation13]  }
  0xce   :  { %s145_s7 = sshll.u32 %s3925_s24, 4  ;;  %s165_s9 = sshll.u32 %s3926_s10, 4  ;;  %s146_s7 = int_to_ptr.vmem [resolvable:$true] %s145_s7  ;;  %s166_s9 = int_to_ptr.vmem [resolvable:$true] %s165_s9 }
  0xcf   :  { %s3593_s11 = scalar_lea.vmem %s146_s7, 16  ;;  %s3597_s15 = scalar_lea.vmem %s146_s7, 32 }
  0xd0   :  { %p3594_p4 = scmp.ne.s32.totalorder %s146_s7, %s3593_s11  ;;  %p3598_p5 = scmp.lt.s32.totalorder %s146_s7, %s146_s7 }
  0xd1   :  { %p3599_p6 = scmp.lt.s32.totalorder %s3597_s15, %s3593_s11 }
  0xd3   :  { %p3600_p7 = por %p3599_p6, %p3598_p5 }
  0xd5   :  { %p3601_p8 = pnand %p3600_p7, %p3594_p4 }
  0xd7   :  { %3604 = shalt.err (!%p3601_p8)
}
  0xd8   :  { %148 = dma.hbm_to_vmem [thread:$0]  %s3979_s21, 16, %s146_s7, [#allocation9]  }
  0xd9   :  { %s3613_s5 = scalar_lea.vmem %s166_s9, 16  ;;  %s3617_s19 = scalar_lea.vmem %s166_s9, 32 }
  0xda   :  { %p3614_p9 = scmp.ne.s32.totalorder %s166_s9, %s3613_s5  ;;  %p3618_p10 = scmp.lt.s32.totalorder %s166_s9, %s166_s9 }
  0xdb   :  { %p3619_p11 = scmp.lt.s32.totalorder %s3617_s19, %s3613_s5 }
  0xdd   :  { %p3620_p12 = por %p3619_p11, %p3618_p10 }
  0xdf   :  { %p3621_p13 = pnand %p3620_p12, %p3614_p9 }
  0xe1   :  { %3624 = shalt.err (!%p3621_p13)
}
  0xe2   :  { %168 = dma.hbm_to_vmem [thread:$0]  %s3989_s29, 16, %s166_s9, [#allocation12]  }
  0xe3   :  { %s3927_s13 = smov [#allocation16]   ;;  %s3928_s6 = smov [#allocation19]  }
  0xe4   :  { %s187_s16 = sshll.u32 %s3927_s13, 4  ;;  %s208_s17 = sshll.u32 %s3928_s6, 4  ;;  %s188_s16 = int_to_ptr.vmem [resolvable:$true] %s187_s16  ;;  %s209_s17 = int_to_ptr.vmem [resolvable:$true] %s208_s17 }
  0xe5   :  { %s3633_s18 = scalar_lea.vmem %s188_s16, 16  ;;  %s3637_s22 = scalar_lea.vmem %s188_s16, 32 }
  0xe6   :  { %p3634_p0 = scmp.ne.s32.totalorder %s188_s16, %s3633_s18  ;;  %p3638_p1 = scmp.lt.s32.totalorder %s188_s16, %s188_s16 }
  0xe7   :  { %p3639_p2 = scmp.lt.s32.totalorder %s3637_s22, %s3633_s18 }
  0xe9   :  { %p3640_p3 = por %p3639_p2, %p3638_p1 }
  0xeb   :  { %p3641_p4 = pnand %p3640_p3, %p3634_p0 }
  0xed   :  { %3644 = shalt.err (!%p3641_p4)
}
  0xee   :  { %s4618_s21 = sld [smem:[#allocation56_spill]]  ;;  %s3653_s0 = scalar_lea.vmem %s209_s17, 512 }
  0xef   :  { %p3654_p5 = scmp.ne.s32.totalorder %s209_s17, %s3653_s0  ;;  %p3658_p6 = scmp.lt.s32.totalorder %s209_s17, %s209_s17 }
  0xf0   :  { %p3659_p7 = scmp.lt.s32.totalorder %s3653_s0, %s3653_s0 }
  0xf2   :  { %p3660_p8 = por %p3659_p7, %p3658_p6 }
  0xf4   :  { %190 = dma.hbm_to_vmem [thread:$0]  %s4618_s21, 16, %s188_s16, [#allocation15]  }
  0xf5   :  { %p3661_p9 = pnand %p3660_p8, %p3654_p5 }
  0xf7   :  { %3664 = shalt.err (!%p3661_p9)
}
  0xf8   :  { %s4619_s29 = sld [smem:[#allocation58_spill]]  ;;  %s3929_s23 = smov [#allocation22]  }
  0xf9   :  { %s230_s20 = sshll.u32 %s3929_s23, 4  ;;  %s3930_s4 = smov [#allocation25]   ;;  %s231_s20 = int_to_ptr.vmem [resolvable:$true] %s230_s20 }
  0xfa   :  { %s252_s1 = sshll.u32 %s3930_s4, 4  ;;  %s3673_s25 = scalar_lea.vmem %s231_s20, 512  ;;  %s253_s1 = int_to_ptr.vmem [resolvable:$true] %s252_s1 }
  0xfb   :  { %p3674_p10 = scmp.ne.s32.totalorder %s231_s20, %s3673_s25  ;;  %p3678_p11 = scmp.lt.s32.totalorder %s231_s20, %s231_s20 }
  0xfc   :  { %p3679_p12 = scmp.lt.s32.totalorder %s3673_s25, %s3673_s25 }
  0xfe   :  { %214 = dma.hbm_to_vmem [thread:$0]  %s4619_s29, 512, %s209_s17, [#allocation18], %s3913_s26, %s3913_s26, %s3914_s28  }
  0xff   :  { %p3680_p13 = por %p3679_p12, %p3678_p11 }
 0x101   :  { %p3681_p0 = pnand %p3680_p13, %p3674_p10 }
 0x103   :  { %3684 = shalt.err (!%p3681_p0)
}
 0x104   :  { %s4620_s2 = sld [smem:[#allocation59_spill]]  ;;  %s3693_s3 = scalar_lea.vmem %s253_s1, 512 }
 0x105   :  { %p3694_p1 = scmp.ne.s32.totalorder %s253_s1, %s3693_s3  ;;  %p3698_p2 = scmp.lt.s32.totalorder %s253_s1, %s253_s1 }
 0x106   :  { %p3699_p3 = scmp.lt.s32.totalorder %s3693_s3, %s3693_s3 }
 0x108   :  { %p3700_p4 = por %p3699_p3, %p3698_p2 }
 0x10a   :  { %236 = dma.hbm_to_vmem [thread:$0]  %s4620_s2, 512, %s231_s20, [#allocation21], %s3913_s26, %s3913_s26, %s3914_s28  }
 0x10b   :  { %p3701_p5 = pnand %p3700_p4, %p3694_p1 }
 0x10d   :  { %3704 = shalt.err (!%p3701_p5)
}
 0x10e   :  { %s4621_s8 = sld [smem:[#allocation60_spill]]  ;;  %s3931_s24 = smov [#allocation28]  }
 0x10f   :  { %s274_s7 = sshll.u32 %s3931_s24, 4  ;;  %s3932_s10 = smov [#allocation31]   ;;  %s275_s7 = int_to_ptr.vmem [resolvable:$true] %s274_s7 }
 0x110   :  { %s296_s9 = sshll.u32 %s3932_s10, 4  ;;  %s3713_s11 = scalar_lea.vmem %s275_s7, 512  ;;  %s297_s9 = int_to_ptr.vmem [resolvable:$true] %s296_s9 }
 0x111   :  { %p3714_p6 = scmp.ne.s32.totalorder %s275_s7, %s3713_s11  ;;  %p3718_p7 = scmp.lt.s32.totalorder %s275_s7, %s275_s7 }
 0x112   :  { %p3719_p8 = scmp.lt.s32.totalorder %s3713_s11, %s3713_s11 }
 0x114   :  { %258 = dma.hbm_to_vmem [thread:$0]  %s4621_s8, 512, %s253_s1, [#allocation24], %s3913_s26, %s3913_s26, %s3914_s28  }
 0x115   :  { %p3720_p9 = por %p3719_p8, %p3718_p7 }
 0x117   :  { %p3721_p10 = pnand %p3720_p9, %p3714_p6 }
 0x119   :  { %3724 = shalt.err (!%p3721_p10)
}
 0x11a   :  { %s4622_s15 = sld [smem:[#allocation61_spill]]  ;;  %s3733_s5 = scalar_lea.vmem %s297_s9, 512 }
 0x11b   :  { %p3734_p11 = scmp.ne.s32.totalorder %s297_s9, %s3733_s5  ;;  %p3738_p12 = scmp.lt.s32.totalorder %s297_s9, %s297_s9 }
 0x11c   :  { %p3739_p13 = scmp.lt.s32.totalorder %s3733_s5, %s3733_s5 }
 0x11e   :  { %p3740_p0 = por %p3739_p13, %p3738_p12 }
 0x120   :  { %280 = dma.hbm_to_vmem [thread:$0]  %s4622_s15, 512, %s275_s7, [#allocation27], %s3913_s26, %s3913_s26, %s3914_s28  }
 0x121   :  { %p3741_p1 = pnand %p3740_p0, %p3734_p11 }
 0x123   :  { %3744 = shalt.err (!%p3741_p1)
}
 0x124   :  { %s4623_s19 = sld [smem:[#allocation62_spill]]  ;;  %s3933_s13 = smov [#allocation34]  }
 0x125   :  { %s324_s16 = sshll.u32 %s3933_s13, 4  ;;  %s3934_s6 = smov [#allocation35]   ;;  %s325_s16 = int_to_ptr.vmem [resolvable:$true] %s324_s16 }
 0x126   :  { %s346_s17 = sshll.u32 %s3934_s6, 4  ;;  %s3753_s18 = scalar_lea.vmem %s325_s16, 512  ;;  %s347_s17 = int_to_ptr.vmem [resolvable:$true] %s346_s17 }
 0x127   :  { %p3754_p2 = scmp.ne.s32.totalorder %s325_s16, %s3753_s18  ;;  %p3758_p3 = scmp.lt.s32.totalorder %s325_s16, %s325_s16 }
 0x128   :  { %p3759_p4 = scmp.lt.s32.totalorder %s3753_s18, %s3753_s18 }
 0x12a   :  { %302 = dma.hbm_to_vmem [thread:$0]  %s4623_s19, 512, %s297_s9, [#allocation30], %s3913_s26, %s3913_s26, %s3914_s28  }
 0x12b   :  { %p3760_p5 = por %p3759_p4, %p3758_p3 }
 0x12d   :  { %p3761_p6 = pnand %p3760_p5, %p3754_p2 }
 0x12f   :  { %3764 = shalt.err (!%p3761_p6)
}
 0x130   :  { %s4624_s22 = sld [smem:[#allocation65_spill]]  ;;  %s3773_s21 = scalar_lea.vmem %s347_s17, 8192 }
 0x131   :  { %p3774_p7 = scmp.ne.s32.totalorder %s347_s17, %s3773_s21  ;;  %p3778_p8 = scmp.lt.s32.totalorder %s347_s17, %s347_s17 }
 0x132   :  { %p3779_p9 = scmp.lt.s32.totalorder %s3773_s21, %s3773_s21 }
 0x134   :  { %p3780_p10 = por %p3779_p9, %p3778_p8 }
 0x136   :  { %330 = dma.hbm_to_vmem [thread:$0]  %s4624_s22, 512, %s325_s16, [#allocation33], %s3913_s26, %s3913_s26, %s3914_s28  }
 0x137   :  { %p3781_p11 = pnand %p3780_p10, %p3774_p7 }
 0x139   :  { %3784 = shalt.err (!%p3781_p11)
}
 0x13a   :  { %s4625_s0 = sld [smem:[#allocation71_spill]] }
 0x140   :  { %352 = dma.hbm_to_vmem [thread:$0]  %s4625_s0, 8192, %s347_s17, [#allocation36], %s3913_s26, %s3913_s26, %s3914_s28  }
 0x141   :  { %3845 = dma.done.wait [#allocation3], 128  }
 0x142   :  { %3846 = vsyncadd [#allocation3], 4294967168 }
 0x143   :  { %3847 = dma.done.wait [#allocation6], 256  }
 0x144   :  { %3848 = vsyncadd [#allocation6], 4294967040 }
 0x145   :  { %3849 = dma.done.wait [#allocation9], 272  }
 0x146   :  { %3850 = vsyncadd [#allocation9], 4294967024 }
 0x147   :  { %3851 = dma.done.wait [#allocation12], 32  }
 0x148   :  { %3852 = vsyncadd [#allocation12], 4294967264 }
 0x149   :  { %3853 = dma.done.wait [#allocation15], 32  }
 0x14a   :  { %3854 = vsyncadd [#allocation15], 4294967264 }
 0x14b   :  { %3855 = dma.done.wait [#allocation18], 528  }
 0x14c   :  { %3856 = vsyncadd [#allocation18], 4294966768 }
 0x14d   :  { %3857 = dma.done.wait [#allocation21], 528  }
 0x14e   :  { %3858 = vsyncadd [#allocation21], 4294966768 }
 0x14f   :  { %3859 = dma.done.wait [#allocation24], 528  }
 0x150   :  { %3860 = vsyncadd [#allocation24], 4294966768 }
 0x151   :  { %3861 = dma.done.wait [#allocation27], 528  }
 0x152   :  { %3862 = vsyncadd [#allocation27], 4294966768 }
 0x153   :  { %3863 = dma.done.wait [#allocation30], 528  }
 0x154   :  { %3864 = vsyncadd [#allocation30], 4294966768 }
 0x155   :  { %3865 = dma.done.wait [#allocation33], 1024  }
 0x156   :  { %3866 = vsyncadd [#allocation33], 4294966272 }
 0x157   :  { %3867 = dma.done.wait [#allocation36], 8192  }
 0x158   :  { %3868 = vsyncadd [#allocation36], 4294959104  ;;  %s4626_s26 = sld [smem:[#allocation55_spill]]  ;;  %vm433_vm0 = vcmask 261120   ;;  %v4200_v0 = vld [vmem:[#allocation2] sm:$0xff]  ;;  %v3935_v11 = vmov 0.0  }
 0x159   :  { %v434_v1 = vsel %vm433_vm0, %v4200_v0, 0.0  ;;  %558 = vmatprep.mubr.f32.mxu0 %v3935_v11  ;;  %3003 = vmatprep.subr.mxu1 %v3935_v11  ;;  %v2773_v20 = vld [vmem:[#allocation10] ss:$0 sm:$0xff]  ;;  %v2774_v22 = vld [vmem:[#allocation11] ss:$0 sm:$0xff]  ;;  %vm469_vm1 = vcmask 1045504  }
 0x15a   :  { %435 = vadd.xlane.f32.xlu0 %v434_v1  ;;  %v430_v25 = vld [vmem:[#allocation5] sm:$0x3f]  ;;  %v431_v26 = vld [vmem:[#allocation8] sm:$0xff]  ;;  %v432_v28 = vld [vmem:[#allocation8 + $0x8] sm:$0x3f]  ;;  %s3936_s28 = smov 64  }
 0x15b   :  { %v470_v30 = vrot.slane %v431_v26, 2  ;;  %v471_v31 = vrot.slane %v432_v28, 2  ;;  %627 = vrot.lane.b32.xlu1 %v3935_v11, %s3936_s28  ;;  %vm3937_vm2 = vmmov 0   ;;  %vm608_vm3 = vcmask 1041408   ;;  %v2780_v49 = vld [vmem:[#allocation17] ss:$0 sm:$0xff] }
 0x15c   :  { %3009 = vmatprep.mubr.msk.f32.mxu1 %vm3937_vm2, %v3935_v11  ;;  %v2779_v56 = vld [vmem:[#allocation16] ss:$0 sm:$0xff]  ;;  %s3938_s29 = smov 5   ;;  %s3939_s23 = smov 1   ;;  %vm729_vm4 = vcmask 1040384   ;;  %vm732_vm5 = vcmask 1042432  }
 0x15d   :  { %v472_v33 = vsel %vm469_vm1, %v470_v30, %v471_v31  ;;  %s3940_s20 = smov 7   ;;  %s3941_s4 = smov 2   ;;  %vm734_vm6 = vcmask 1043456   ;;  %vm736_vm7 = vcmask 1044480   ;;  %vm739_vm8 = vcmask 1046528  }
 0x15e   :  { %v483_v7 = vld [vmem:[%s4626_s26 + $0x38] sm:$0xff]  ;;  %v482_v8 = vld [vmem:[%s4626_s26 + $0x30] sm:$0xff]  ;;  %v481_v9 = vld [vmem:[%s4626_s26 + $0x28] sm:$0xff]  ;;  %s3942_s1 = smov 32   ;;  %s3943_s25 = smov 3   ;;  %vm834_vm10 = vcmask 113664  }
 0x15f   :  { %518 = vmatprep.subr.mxu0 %v483_v7  ;;  %v480_v10 = vld [vmem:[%s4626_s26 + $0x20] sm:$0xff]  ;;  %v479_v12 = vld [vmem:[%s4626_s26 + $0x18] sm:$0xff]  ;;  %v478_v13 = vld [vmem:[%s4626_s26 + $0x10] sm:$0xff]  ;;  %s3944_s2 = smov 4   ;;  %s3945_s3 = smov 96   ;;  %vm1229_vm11 = vcmask 523264  }
 0x160   :  { %519 = vmatpush1.msra.mxu0 %v482_v8  ;;  %v477_v14 = vld [vmem:[%s4626_s26 + $0x8] sm:$0xff]  ;;  %v476_v15 = vld [vmem:[%s4626_s26] sm:$0xff]  ;;  %s3946_s8 = smov 6   ;;  %s3947_s24 = smov 121   ;;  %vm2099_vm12 = vcmask 523520   ;;  %vm2091_vm13 = vcmask 259072  }
 0x161   :  { %520 = vmatprep.subr.mxu0 %v481_v9  ;;  %s4629_s7 = sld [smem:[#allocation57_spill]]  ;;  %s3948_s22 = smov [#allocation38]  }
 0x162   :  { %521 = vmatpush1.msra.mxu0 %v480_v10  ;;  %s4630_s10 = sld [smem:[#allocation67_spill]]  ;;  %s2698_s21 = sshll.u32 %s3948_s22, 4  ;;  %s2699_s21 = int_to_ptr.vmem [resolvable:$true] %s2698_s21 }
 0x163   :  { %522 = vmatprep.subr.mxu0 %v479_v12  ;;  %s4631_s9 = sld [smem:[#allocation66_spill]]  ;;  %s3785_s0 = scalar_lea.vmem %s2699_s21, 128 }
 0x164   :  { %523 = vmatpush1.msra.mxu0 %v478_v13  ;;  %s4632_s11 = sld [smem:[#allocation68_spill]]  ;;  %p3786_p12 = scmp.ne.s32.totalorder %s2699_s21, %s3785_s0 }
 0x165   :  { %524 = vmatprep.subr.mxu0 %v477_v14  ;;  %s4633_s15 = sld [smem:[#allocation63_spill]]  ;;  %p3790_p13 = scmp.lt.s32.totalorder %s2699_s21, %s2699_s21 }
 0x166   :  { %525 = vmatpush1.msra.mxu0 %v476_v15  ;;  %s4634_s5 = sld [smem:[#allocation64_spill]]  ;;  %p3791_p0 = scmp.lt.s32.totalorder %s3785_s0, %s3785_s0 }
 0x167   :  { %3019 = vmatprep.subr.mxu0 %v3935_v11  ;;  %v1222_v26 = vld [vmem:[%s4629_s7 + $0x8] sm:$0xff]  ;;  %s4635_s19 = sld [smem:[#allocation69_spill]] }
 0x168   :  { %s4636_s13 = sld [smem:[#allocation70_spill]]  ;;  %p3792_p1 = por %p3791_p0, %p3790_p13 }
 0x169   :  { %s4637_s16 = sld [smem:[#allocation73_spill]] }
 0x16a   :  { %s4638_s6 = sld [smem:[#allocation75_spill]]  ;;  %p3793_p2 = pnand %p3792_p1, %p3786_p12 }
 0x16b   :  { %s4639_s17 = sld [smem:[#allocation72_spill]] }
 0x16c   :  { %s4640_s18 = sld [smem:[#allocation74_spill]] }
 0x1cd   :  { %v628_v35 = vpop.permute.xlu1 %627 }
 0x1ce   :  { %3004 = vmatpush3.xpose.msk.msra.mxu1 %vm433_vm0, %v628_v35 }
 0x1cf   :  { %3005 = vmatprep.subr.mxu1 %v3935_v11 }
 0x1e3   :  { %v436_v2 = vpop.xlane.xlu0 %435 }
 0x1e4   :  { %v438_v3 = vmul.f32 0.03125, %v436_v2 }
 0x1e6   :  { %v439_v4 = vsub.f32 %v4200_v0, %v438_v3 }
 0x1e8   :  { %v440_v5 = vmul.f32 %v439_v4, %v439_v4 }
 0x1ea   :  { %v441_v6 = vsel %vm433_vm0, %v440_v5, 0.0 }
 0x1eb   :  { %442 = vadd.xlane.f32.xlu0 %v441_v6 }
 0x274   :  { %v443_v16 = vpop.xlane.xlu0 %442 }
 0x275   :  { %v444_v17 = vmul.f32 0.03125, %v443_v16 }
 0x277   :  { %v445_v18 = vadd.f32 1e-05, %v444_v17 }
 0x279   :  { %3312 = vrsqrt.f32 %v445_v18 }
 0x286   :  { %v3313_v19 = vpop.eup %3312 }
 0x287   :  { %v447_v21 = vmul.f32 %v3313_v19, %v439_v4 }
 0x289   :  { %v455_v23 = vmul.f32 %v2773_v20, %v447_v21 }
 0x28b   :  { %v463_v24 = vadd.f32 %v2774_v22, %v455_v23  ;;  %v599_v22 = vlaneseq }
 0x28d   :  { %v465_v27 = vrot.slane %v463_v24, 2  ;;  %v4307_v23 = vshrl.u32 %v599_v22, 7  ;;  %v602_v24 = vand.u32 127, %v599_v22  ;;  %v1225_v22 = vld [vmem:[%s4629_s7 + $0x20] sm:$0xff] }
 0x28f   :  { %v474_v29 = vsel %vm469_vm1, %v430_v25, %v465_v27  ;;  %v475_v32 = vsel %vm469_vm1, %v465_v27, %v470_v30  ;;  %v603_v25 = vsub.s32 %v602_v24, %v4307_v23  ;;  %v1224_v24 = vld [vmem:[%s4629_s7 + $0x18] sm:$0xff] }
 0x290   :  { %2775 = vmatmul.mubr.msk.f32.vlgmr.msra.gmra.mxu0 %vm433_vm0, %v474_v29 }
 0x291   :  { %564 = vmatprep.mubr.f32.mxu0 %v3935_v11  ;;  %vm4310_vm9 = vcmp.gt.s32.totalorder %v603_v25, 6  ;;  %v1223_v25 = vld [vmem:[%s4629_s7 + $0x10] sm:$0xff] }
 0x294   :  { %2776 = vmatmul.mubr.msk.f32.gmra.mxu0 %vm433_vm0, %v475_v32 }
 0x295   :  { %570 = vmatprep.mubr.f32.mxu0 %v3935_v11 }
 0x298   :  { %2777 = vmatmul.mubr.msk.f32.gmra.mxu0 %vm433_vm0, %v472_v33 }
 0x299   :  { %575 = vmatprep.mubr.f32.mxu0 %v3935_v11 }
 0x29c   :  { %2778 = vmatmul.mubr.msk.f32.gmra.mxu0 %vm433_vm0, %v471_v31 }
 0x29d   :  { %3023 = vmatprep.mubr.msk.f32.mxu0 %vm3937_vm2, %v3935_v11 }
 0x350   :  { %v4229_v34 = vpop.f32.mrf.mxu0 }
 0x351   :  { %v597_v52 = vadd.f32 %v2780_v49, %v4229_v34  ;;  %v588_v60 = vadd.f32 %v2779_v56, %v4229_v34 }
 0x352   :  { %v4232_v36 = vpop.f32.mrf.mxu0 }
 0x353   :  { %v618_v55 = vrot.slane %v597_v52, 6  ;;  %v743_v63 = vrot.slane %v588_v60, 6 }
 0x354   :  { %v4235_v37 = vpop.f32.mrf.mxu0 }
 0x355   :  { %v598_v50 = vadd.f32 %v2780_v49, %v4235_v37  ;;  %v589_v58 = vadd.f32 %v2779_v56, %v4235_v37 }
 0x356   :  { %v4237_v38 = vpop.f32.mrf.mxu0 }
 0x357   :  { %3020 = vmatpush3.msk.msra.mxu0 %vm469_vm1, %v4237_v38  ;;  %v609_v41 = vrot.slane %v4237_v38, 6  ;;  %v619_v53 = vrot.slane %v598_v50, 6  ;;  %v744_v61 = vrot.slane %v589_v58, 6 }
 0x358   :  { %v572_v39 = vpop.f32.mrf.mxu0  ;;  %3021 = vmatprep.subr.mxu0 %v3935_v11 }
 0x359   :  { %3022 = vmatpush3.msra.mxu0 %v4232_v36  ;;  %v620_v59 = vsel %vm608_vm3, %v618_v55, %v619_v53  ;;  %v4278_v1 = vsel %vm608_vm3, %v743_v63, %v744_v61 }
 0x35a   :  { %v573_v40 = vpop.f32.mrf.mxu0  ;;  %3035 = vmatprep.subr.mxu0 %v3935_v11 }
 0x35b   :  { %v610_v42 = vrot.slane %v573_v40, 6 }
 0x35c   :  { %v577_v43 = vpop.f32.mrf.mxu0 }
 0x35d   :  { %v611_v44 = vsel %vm608_vm3, %v609_v41, %v610_v42 }
 0x35e   :  { %623 = vrot.lane.b32.xlu0 %v611_v44, %s3936_s28  ;;  %v578_v45 = vpop.f32.mrf.mxu0 }
 0x35f   :  { %v612_v46 = vrot.slane %v578_v45, 6 }
 0x361   :  { %v613_v47 = vsel %vm608_vm3, %v610_v42, %v612_v46 }
 0x362   :  { %v4253_v48 = vsel %vm469_vm1, %v613_v47, 0.0 }
 0x363   :  { %625 = vrot.lane.b32.xlu1 %v4253_v48, %s3936_s28 }
 0x367   :  { %750 = vrot.lane.b32.xlu1 %v4235_v37, %s3936_s28 }
 0x36b   :  { %748 = vrot.lane.b32.xlu1 %v4229_v34, %s3936_s28 }
 0x3d0   :  { %v624_v54 = vpop.permute.xlu0 %623 }
 0x3d5   :  { %v626_v51 = vpop.permute.xlu1 %625 }
 0x3d6   :  { %3006 = vmatpush3.xpose.msk.msra.mxu1 %vm433_vm0, %v626_v51 }
 0x3d7   :  { %3007 = vmatprep.subr.mxu1 %v3935_v11 }
 0x3d9   :  { %v751_v57 = vpop.permute.xlu1 %750 }
 0x3da   :  { %3008 = vmatpush3.xpose.msk.msra.mxu1 %vm433_vm0, %v624_v54 }
 0x3db   :  { %3012 = vmatprep.subr.mxu1 %v3935_v11 }
 0x3dd   :  { %3010 = vmatmul.mubr.msk.f32.vlgmr.msra.gmra.mxu1 %vm433_vm0, %v620_v59  ;;  %v749_v62 = vpop.permute.xlu1 %748 }
 0x3de   :  { %3013 = vmatpush3.xpose.msk.msra.mxu1 %vm433_vm0, %v751_v57  ;;  %3016 = vmatprep.mubr.msk.f32.mxu1 %vm3937_vm2, %v3935_v11 }
 0x3df   :  { %3014 = vmatprep.subr.mxu1 %v3935_v11 }
 0x3e2   :  { %3015 = vmatpush3.xpose.msk.msra.mxu1 %vm433_vm0, %v749_v62 }
 0x3e3   :  { %3026 = vmatprep.subr.mxu1 %v3935_v11 }
 0x3e5   :  { %3017 = vmatmul.mubr.msk.f32.vlgmr.msra.gmra.mxu1 %vm433_vm0, %v4278_v1 }
 0x3e6   :  { %3032 = vmatprep.mubr.msk.f32.mxu1 %vm3937_vm2, %v3935_v11 }
 0x49d   :  { %v703_v2 = vpop.f32.mrf.mxu1 }
 0x49e   :  { %720 = vrot.lane.b32.xlu0 %v703_v2, %s3938_s29  ;;  %708 = vrot.lane.b32.xlu1 %v703_v2, %s3939_s23 }
 0x49f   :  { %v3011_v3 = vpop.f32.mrf.mxu1 }
 0x4a2   :  { %726 = vrot.lane.b32.xlu0 %v703_v2, %s3940_s20  ;;  %711 = vrot.lane.b32.xlu1 %v703_v2, %s3941_s4 }
 0x4a5   :  { %v828_v4 = vpop.f32.mrf.mxu1 }
 0x4a6   :  { %927 = vrot.lane.b32.xlu0 %v3935_v11, %s3942_s1  ;;  %714 = vrot.lane.b32.xlu1 %v703_v2, %s3943_s25 }
 0x4a7   :  { %v3018_v5 = vpop.f32.mrf.mxu1 }
 0x4aa   :  { %923 = vrot.lane.b32.xlu0 %v611_v44, %s3942_s1  ;;  %717 = vrot.lane.b32.xlu1 %v703_v2, %s3944_s2 }
 0x4ae   :  { %921 = vrot.lane.b32.xlu0 %v620_v59, %s3945_s3  ;;  %723 = vrot.lane.b32.xlu1 %v703_v2, %s3946_s8 }
 0x510   :  { %v721_v6 = vpop.permute.xlu0 %720  ;;  %v709_v7 = vpop.permute.xlu1 %708 }
 0x511   :  { %v730_v13 = vsel %vm729_vm4, %v703_v2, %v709_v7 }
 0x514   :  { %v727_v8 = vpop.permute.xlu0 %726  ;;  %v712_v9 = vpop.permute.xlu1 %711 }
 0x515   :  { %v731_v14 = vsel %vm608_vm3, %v730_v13, %v712_v9 }
 0x518   :  { %v928_v10 = vpop.permute.xlu0 %927  ;;  %v715_v12 = vpop.permute.xlu1 %714 }
 0x519   :  { %3027 = vmatpush3.xpose.msk.msra.mxu1 %vm433_vm0, %v928_v10  ;;  %v733_v15 = vsel %vm732_vm5, %v731_v14, %v715_v12 }
 0x51a   :  { %3028 = vmatprep.subr.mxu1 %v3935_v11 }
 0x51c   :  { %v718_v16 = vpop.permute.xlu1 %717  ;;  %v924_v32 = vpop.permute.xlu0 %923 }
 0x51d   :  { %v735_v17 = vsel %vm734_vm6, %v733_v15, %v718_v16 }
 0x51e   :  { %v737_v18 = vsel %vm736_vm7, %v735_v17, %v721_v6 }
 0x520   :  { %v724_v19 = vpop.permute.xlu1 %723  ;;  %v922_v35 = vpop.permute.xlu0 %921 }
 0x521   :  { %v738_v20 = vsel %vm469_vm1, %v737_v18, %v724_v19 }
 0x522   :  { %v740_v21 = vsel %vm739_vm8, %v738_v20, %v727_v8  ;;  %v1227_v20 = vld [vmem:[%s4629_s7 + $0x30] sm:$0xff] }
 0x523   :  { %753 = vrot.lane.b32.xlu1 %v740_v21, %s3947_s24  ;;  %v1226_v21 = vld [vmem:[%s4629_s7 + $0x28] sm:$0xff] }
 0x527   :  { %925 = vrot.lane.b32.xlu1 %v4253_v48, %s3942_s1 }
 0x595   :  { %v754_v27 = vpop.permute.xlu1 %753 }
 0x596   :  { %v829_v28 = vadd.f32 %v828_v4, %v754_v27  ;;  %v1221_v27 = vld [vmem:[%s4629_s7] sm:$0xff] }
 0x598   :  { %v832_v29 = vsel %vm4310_vm9, -1e+30, %v829_v28  ;;  %v1306_v28 = vld [vmem:[#allocation19 + $0x18] sm:$0xff] }
 0x599   :  { %v926_v30 = vpop.permute.xlu1 %925  ;;  %v833_v31 = vmul.f32 0.17677669, %v832_v29  ;;  %v1305_v29 = vld [vmem:[#allocation19 + $0x10] sm:$0xff] }
 0x59a   :  { %3029 = vmatpush3.xpose.msk.msra.mxu1 %vm433_vm0, %v926_v30  ;;  %v1304_v30 = vld [vmem:[#allocation19 + $0x8] sm:$0xff] }
 0x59b   :  { %v835_v33 = vsel %vm834_vm10, %v833_v31, -inf  ;;  %3030 = vmatprep.subr.mxu1 %v3935_v11 }
 0x59c   :  { %836 = vmax.xlane.f32.xlu1 %v835_v33 }
 0x59e   :  { %3031 = vmatpush3.xpose.msk.msra.mxu1 %vm433_vm0, %v924_v32 }
 0x59f   :  { %3049 = vmatprep.subr.mxu1 %v3935_v11 }
 0x5a1   :  { %3033 = vmatmul.mubr.msk.f32.vlgmr.msra.gmra.mxu1 %vm433_vm0, %v922_v35 }
 0x5a2   :  { %3065 = vmatprep.mubr.msk.f32.mxu1 %vm3937_vm2, %v3935_v11 }
 0x5ad   :  { %1040 = vrot.lane.b32.xlu1 %v4235_v37, %s3942_s1 }
 0x5b1   :  { %1036 = vrot.lane.b32.xlu1 %v4278_v1, %s3945_s3 }
 0x625   :  { %v837_v39 = vpop.xlane.xlu1 %836 }
 0x626   :  { %v838_v40 = vsub.f32 %v833_v31, %v837_v39  ;;  %v1303_v31 = vld [vmem:[#allocation19] sm:$0xff] }
 0x628   :  { %v839_v41 = vmul.f32 1.442695, %v838_v40  ;;  %v1390_v40 = vld [vmem:[#allocation22 + $0x18] sm:$0xff] }
 0x629   :  { %v1041_v46 = vpop.permute.xlu1 %1040 }
 0x62a   :  { %3314 = vpow2.f32 %v839_v41 }
 0x62d   :  { %v1037_v47 = vpop.permute.xlu1 %1036 }
 0x637   :  { %v3315_v42 = vpop.eup %3314 }
 0x638   :  { %v841_v43 = vsel %vm834_vm10, %v3315_v42, 0.0 }
 0x639   :  { %842 = vadd.xlane.f32.xlu0 %v841_v43 }
 0x64f   :  { %1038 = vrot.lane.b32.xlu0 %v4229_v34, %s3942_s1 }
 0x661   :  { %v1003_v44 = vpop.f32.mrf.mxu1 }
 0x662   :  { %1008 = vrot.lane.b32.xlu1 %v1003_v44, %s3939_s23  ;;  %1011 = vrot.lane.b32.xlu0 %v1003_v44, %s3941_s4 }
 0x663   :  { %v3034_v37 = vpop.f32.mrf.mxu1 }
 0x664   :  { %v1387_v37 = vld [vmem:[#allocation22] sm:$0xff] }
 0x666   :  { %1014 = vrot.lane.b32.xlu1 %v1003_v44, %s3943_s25  ;;  %1017 = vrot.lane.b32.xlu0 %v1003_v44, %s3944_s2 }
 0x66a   :  { %1020 = vrot.lane.b32.xlu1 %v1003_v44, %s3938_s29  ;;  %1023 = vrot.lane.b32.xlu0 %v1003_v44, %s3946_s8 }
 0x66e   :  { %1026 = vrot.lane.b32.xlu1 %v1003_v44, %s3940_s20 }
 0x6c2   :  { %v843_v45 = vpop.xlane.xlu0 %842 }
 0x6c3   :  { %3316 = vrcp.f32 %v843_v45  ;;  %v1489_v45 = vld [vmem:[#allocation25 + $0x18] sm:$0xff] }
 0x6c6   :  { %v1039_v48 = vpop.permute.xlu0 %1038 }
 0x6d0   :  { %v3317_v34 = vpop.eup %3316 }
 0x6d1   :  { %v845_v49 = vmul.f32 %v3317_v34, %v3315_v42  ;;  %v1389_v42 = vld [vmem:[#allocation22 + $0x10] sm:$0xff] }
 0x6d2   :  { %v1487_v34 = vld [vmem:[#allocation25 + $0x8] sm:$0xff] }
 0x6d3   :  { %3024 = vmatmul.mubr.msk.f32.vlgmr.msra.gmra.mxu0 %vm834_vm10, %v845_v49 }
 0x6d4   :  { %3036 = vmatpush3.xpose.msk.msra.mxu0 %vm433_vm0, %v1041_v46  ;;  %v1012_v50 = vpop.permute.xlu0 %1011  ;;  %v1009_v51 = vpop.permute.xlu1 %1008  ;;  %3039 = vmatprep.mubr.msk.f32.mxu0 %vm3937_vm2, %v3935_v11  ;;  %v1488_v46 = vld [vmem:[#allocation25 + $0x10] sm:$0xff] }
 0x6d5   :  { %v1029_v52 = vsel %vm729_vm4, %v1003_v44, %v1009_v51  ;;  %3037 = vmatprep.subr.mxu0 %v3935_v11  ;;  %v1388_v44 = vld [vmem:[#allocation22 + $0x8] sm:$0xff]  ;;  %v2802_v51 = vld [vmem:[#allocation23] ss:$0 sm:$0xff] }
 0x6d6   :  { %v1030_v54 = vsel %vm608_vm3, %v1029_v52, %v1012_v50  ;;  %v2800_v50 = vld [vmem:[#allocation20] ss:$0 sm:$0xff] }
 0x6d8   :  { %3038 = vmatpush3.xpose.msk.msra.mxu0 %vm433_vm0, %v1039_v48  ;;  %v1018_v53 = vpop.permute.xlu0 %1017  ;;  %v1015_v55 = vpop.permute.xlu1 %1014 }
 0x6d9   :  { %v1031_v56 = vsel %vm732_vm5, %v1030_v54, %v1015_v55  ;;  %3042 = vmatprep.subr.mxu0 %v3935_v11 }
 0x6da   :  { %v1032_v57 = vsel %vm734_vm6, %v1031_v56, %v1018_v53 }
 0x6db   :  { %3040 = vmatmul.mubr.msk.f32.vlgmr.msra.gmra.mxu0 %vm433_vm0, %v1037_v47  ;;  %v1486_v47 = vld [vmem:[#allocation25] sm:$0xff] }
 0x6dc   :  { %v1021_v58 = vpop.permute.xlu1 %1020  ;;  %3046 = vmatprep.mubr.msk.f32.mxu0 %vm3937_vm2, %v3935_v11  ;;  %v1024_v59 = vpop.permute.xlu0 %1023 }
 0x6dd   :  { %v1033_v60 = vsel %vm736_vm7, %v1032_v57, %v1021_v58 }
 0x6de   :  { %v1034_v62 = vsel %vm469_vm1, %v1033_v60, %v1024_v59 }
 0x6e0   :  { %v1027_v61 = vpop.permute.xlu1 %1026 }
 0x6e1   :  { %v1035_v63 = vsel %vm739_vm8, %v1034_v62, %v1027_v61  ;;  %v2808_v62 = vld [vmem:[#allocation26] ss:$0 sm:$0xff] }
 0x6e2   :  { %1043 = vrot.lane.b32.xlu0 %v1035_v63, %s3947_s24 }
 0x754   :  { %v1044_v3 = vpop.permute.xlu0 %1043 }
 0x793   :  { %v4356_v1 = vpop.f32.mrf.mxu0 }
 0x795   :  { %v3025_v2 = vpop.f32.mrf.mxu0 }
 0x79b   :  { %v1118_v4 = vpop.f32.mrf.mxu0 }
 0x79c   :  { %v1119_v5 = vadd.f32 %v1118_v4, %v1044_v3 }
 0x79d   :  { %v3041_v6 = vpop.f32.mrf.mxu0 }
 0x79e   :  { %v1122_v7 = vsel %vm4310_vm9, -1e+30, %v1119_v5 }
 0x79f   :  { %v1123_v8 = vmul.f32 0.17677669, %v1122_v7 }
 0x7a1   :  { %v1124_v9 = vsel %vm834_vm10, %v1123_v8, -inf }
 0x7a2   :  { %1125 = vmax.xlane.f32.xlu1 %v1124_v9 }
 0x7b3   :  { %1136 = vrot.lane.b32.xlu1 %v4232_v36, %s3945_s3 }
 0x82b   :  { %v1126_v10 = vpop.xlane.xlu1 %1125 }
 0x82c   :  { %v1127_v12 = vsub.f32 %v1123_v8, %v1126_v10 }
 0x82e   :  { %v1128_v13 = vmul.f32 1.442695, %v1127_v12 }
 0x82f   :  { %v1137_v36 = vpop.permute.xlu1 %1136 }
 0x830   :  { %3318 = vpow2.f32 %v1128_v13 }
 0x83d   :  { %v3319_v14 = vpop.eup %3318 }
 0x83e   :  { %v1130_v15 = vsel %vm834_vm10, %v3319_v14, 0.0 }
 0x83f   :  { %1131 = vadd.xlane.f32.xlu0 %v1130_v15 }
 0x855   :  { %1138 = vrot.lane.b32.xlu0 %v4237_v38, %s3945_s3  ;;  %v1228_v38 = vld [vmem:[%s4629_s7 + $0x38] sm:$0xff] }
 0x856   :  { %3050 = vmatpush3.msra.mxu1 %v1228_v38 }
 0x857   :  { %3051 = vmatprep.subr.mxu1 %v3935_v11 }
 0x858   :  { %3052 = vmatpush3.msra.mxu1 %v1227_v20 }
 0x859   :  { %3053 = vmatprep.subr.mxu1 %v3935_v11 }
 0x85a   :  { %3054 = vmatpush3.msra.mxu1 %v1226_v21 }
 0x85b   :  { %3055 = vmatprep.subr.mxu1 %v3935_v11 }
 0x85c   :  { %3056 = vmatpush3.msra.mxu1 %v1225_v22 }
 0x85d   :  { %3057 = vmatprep.subr.mxu1 %v3935_v11 }
 0x85e   :  { %3058 = vmatpush3.msra.mxu1 %v1224_v24 }
 0x85f   :  { %3059 = vmatprep.subr.mxu1 %v3935_v11 }
 0x860   :  { %3060 = vmatpush3.msra.mxu1 %v1223_v25 }
 0x861   :  { %3061 = vmatprep.subr.mxu1 %v3935_v11 }
 0x862   :  { %3062 = vmatpush3.msra.mxu1 %v1222_v26  ;;  %v2810_v26 = vld [vmem:[#allocation14] ss:$0 sm:$0xff] }
 0x863   :  { %3063 = vmatprep.subr.mxu1 %v3935_v11 }
 0x864   :  { %3064 = vmatpush3.msra.mxu1 %v1221_v27  ;;  %v1634_v27 = vld [vmem:[#allocation34 + $0x18] sm:$0xff] }
 0x865   :  { %3090 = vmatprep.subr.mxu1 %v3935_v11 }
 0x8c8   :  { %v1132_v16 = vpop.xlane.xlu0 %1131 }
 0x8c9   :  { %3320 = vrcp.f32 %v1132_v16 }
 0x8cc   :  { %v1139_v17 = vpop.permute.xlu0 %1138 }
 0x8cd   :  { %3043 = vmatpush3.msk.msra.mxu0 %vm469_vm1, %v1139_v17 }
 0x8ce   :  { %3044 = vmatprep.subr.mxu0 %v3935_v11 }
 0x8cf   :  { %3045 = vmatpush3.msra.mxu0 %v1137_v36 }
 0x8d0   :  { %3068 = vmatprep.subr.mxu0 %v3935_v11 }
 0x8d6   :  { %v3321_v18 = vpop.eup %3320 }
 0x8d7   :  { %v1134_v19 = vmul.f32 %v3321_v18, %v3319_v14 }
 0x8d9   :  { %3047 = vmatmul.mubr.msk.f32.vlgmr.msra.gmra.mxu0 %vm834_vm10, %v1134_v19  ;;  %v2809_v19 = vld [vmem:[#allocation13] ss:$0 sm:$0xff] }
 0x8da   :  { %3076 = vmatprep.mubr.msk.f32.mxu0 %vm3937_vm2, %v3935_v11  ;;  %3069 = vmatpush3.msra.mxu0 %v1306_v28  ;;  %v1633_v28 = vld [vmem:[#allocation34 + $0x10] sm:$0xff] }
 0x8db   :  { %3070 = vmatprep.subr.mxu0 %v3935_v11 }
 0x8dc   :  { %3071 = vmatpush3.msra.mxu0 %v1305_v29  ;;  %v1632_v29 = vld [vmem:[#allocation34 + $0x8] sm:$0xff] }
 0x8dd   :  { %3072 = vmatprep.subr.mxu0 %v3935_v11 }
 0x8de   :  { %3073 = vmatpush3.msra.mxu0 %v1304_v30  ;;  %v1631_v30 = vld [vmem:[#allocation34] sm:$0xff] }
 0x8df   :  { %3074 = vmatprep.subr.mxu0 %v3935_v11 }
 0x8e0   :  { %3075 = vmatpush3.msra.mxu0 %v1303_v31 }
 0x8e1   :  { %3079 = vmatprep.subr.mxu0 %v3935_v11 }
 0x999   :  { %v1212_v32 = vpop.f32.mrf.mxu0 }
 0x99a   :  { %1217 = vrot.lane.b32.xlu1 %v1212_v32, %s3942_s1 }
 0x99b   :  { %v3048_v33 = vpop.f32.mrf.mxu0 }
 0x99e   :  { %1574 = vrot.lane.b32.xlu1 %v2808_v62, %s3936_s28 }
 0xa0c   :  { %v1218_v35 = vpop.permute.xlu1 %1217 }
 0xa0d   :  { %v1220_v39 = vsel %vm433_vm0, %v4356_v1, %v1218_v35  ;;  %v1725_v35 = vld [vmem:[%s4630_s10 + $0x38] sm:$0xff] }
 0xa0e   :  { %3066 = vmatmul.mubr.msk.f32.vlgmr.msra.gmra.mxu1 %vm1229_vm11, %v1220_v39  ;;  %v1724_v39 = vld [vmem:[%s4630_s10 + $0x30] sm:$0xff] }
 0xa0f   :  { %3098 = vmatprep.mubr.msk.f32.mxu1 %vm3937_vm2, %v3935_v11  ;;  %3091 = vmatpush3.msra.mxu1 %v1489_v45 }
 0xa10   :  { %3092 = vmatprep.subr.mxu1 %v3935_v11  ;;  %v1575_v3 = vpop.permute.xlu1 %1574 }
 0xa11   :  { %3093 = vmatpush3.msra.mxu1 %v1488_v46 }
 0xa12   :  { %3094 = vmatprep.subr.mxu1 %v3935_v11 }
 0xa13   :  { %3095 = vmatpush3.msra.mxu1 %v1487_v34 }
 0xa14   :  { %3096 = vmatprep.subr.mxu1 %v3935_v11 }
 0xa15   :  { %3097 = vmatpush3.msra.mxu1 %v1486_v47 }
 0xa16   :  { %3112 = vmatprep.subr.mxu1 %v3935_v11 }
 0xace   :  { %v1299_v41 = vpop.f32.mrf.mxu1 }
 0xacf   :  { %3077 = vmatmul.mubr.msk.f32.vlgmr.msra.gmra.mxu0 %vm433_vm0, %v1299_v41  ;;  %v1722_v41 = vld [vmem:[%s4630_s10 + $0x20] sm:$0xff] }
 0xad0   :  { %3080 = vmatpush3.msra.mxu0 %v1390_v40  ;;  %v3067_v43 = vpop.f32.mrf.mxu1  ;;  %3087 = vmatprep.mubr.msk.f32.mxu0 %vm3937_vm2, %v3935_v11  ;;  %v1723_v40 = vld [vmem:[%s4630_s10 + $0x28] sm:$0xff] }
 0xad1   :  { %3081 = vmatprep.subr.mxu0 %v3935_v11 }
 0xad2   :  { %3082 = vmatpush3.msra.mxu0 %v1389_v42 }
 0xad3   :  { %3083 = vmatprep.subr.mxu0 %v3935_v11 }
 0xad4   :  { %3084 = vmatpush3.msra.mxu0 %v1388_v44  ;;  %v1721_v44 = vld [vmem:[%s4630_s10 + $0x18] sm:$0xff] }
 0xad5   :  { %3085 = vmatprep.subr.mxu0 %v3935_v11 }
 0xad6   :  { %3086 = vmatpush3.msra.mxu0 %v1387_v37 }
 0xad7   :  { %3088 = vmatmul.mubr.msk.f32.vlgmr.msra.gmra.mxu0 %vm433_vm0, %v4200_v0  ;;  %3101 = vmatprep.subr.mxu0 %v3935_v11 }
 0xad8   :  { %3109 = vmatprep.mubr.msk.f32.mxu0 %vm3937_vm2, %v3935_v11  ;;  %3102 = vmatpush3.msra.mxu0 %v1634_v27 }
 0xad9   :  { %3103 = vmatprep.subr.mxu0 %v3935_v11 }
 0xada   :  { %3104 = vmatpush3.msra.mxu0 %v1633_v28 }
 0xadb   :  { %3105 = vmatprep.subr.mxu0 %v3935_v11 }
 0xadc   :  { %3106 = vmatpush3.msra.mxu0 %v1632_v29 }
 0xadd   :  { %3107 = vmatprep.subr.mxu0 %v3935_v11 }
 0xade   :  { %3108 = vmatpush3.msra.mxu0 %v1631_v30 }
 0xadf   :  { %3131 = vmatprep.subr.mxu0 %v3935_v11 }
 0xb8f   :  { %v1383_v48 = vpop.f32.mrf.mxu0 }
 0xb90   :  { %v1384_v53 = vadd.f32 %v2800_v50, %v1383_v48  ;;  %v1720_v48 = vld [vmem:[%s4630_s10 + $0x10] sm:$0xff]  ;;  %v1718_v50 = vld [vmem:[%s4630_s10] sm:$0xff] }
 0xb91   :  { %v3078_v49 = vpop.f32.mrf.mxu0 }
 0xb92   :  { %v1719_v49 = vld [vmem:[%s4630_s10 + $0x8] sm:$0xff] }
 0xb97   :  { %v1467_v52 = vpop.f32.mrf.mxu0 }
 0xb98   :  { %v1468_v54 = vadd.f32 %v2802_v51, %v1467_v52  ;;  %v1809_v51 = vld [vmem:[#allocation28 + $0x18] sm:$0xff]  ;;  %v1808_v52 = vld [vmem:[#allocation28 + $0x10] sm:$0xff] }
 0xb99   :  { %v3089_v55 = vpop.f32.mrf.mxu0 }
 0xb9a   :  { %v1471_v56 = vadd.f32 %v1468_v54, %v1384_v53  ;;  %v2811_v54 = vld [vmem:[%s4631_s9] ss:$0 sm:$0xff] }
 0xb9c   :  { %v2804_v57 = vmul.f32 -1.442695, %v1471_v56  ;;  %v2805_v7 = vadd.f32 -0.1, %v1471_v56 }
 0xb9e   :  { %3322 = vpow2.f32 %v2804_v57  ;;  %v2806_v8 = vmul.f32 -1.442695, %v2805_v7  ;;  %v1989_v7 = vld [vmem:[#allocation32 + $0x8] sm:$0xff] }
 0xbab   :  { %v3323_v58 = vpop.eup %3322 }
 0xbac   :  { %v1475_v59 = vadd.f32 1.0, %v3323_v58 }
 0xbae   :  { %3324 = vrcp.f32 %v1475_v59  ;;  %v1806_v59 = vld [vmem:[#allocation28] sm:$0xff] }
 0xbbb   :  { %v3325_v60 = vpop.eup %3324 }
 0xbbc   :  { %v1485_v61 = vmul.f32 %v3325_v60, %v4200_v0  ;;  %v2813_v60 = vld [vmem:[%s4632_s11] ss:$0 sm:$0xff] }
 0xbbe   :  { %3099 = vmatmul.mubr.msk.f32.vlgmr.msra.gmra.mxu1 %vm433_vm0, %v1485_v61 }
 0xbbf   :  { %3128 = vmatprep.mubr.msk.f32.mxu1 %vm3937_vm2, %v3935_v11  ;;  %3113 = vmatpush3.msra.mxu1 %v1725_v35 }
 0xbc0   :  { %3114 = vmatprep.subr.mxu1 %v3935_v11 }
 0xbc1   :  { %3115 = vmatpush3.msra.mxu1 %v1724_v39 }
 0xbc2   :  { %3116 = vmatprep.subr.mxu1 %v3935_v11 }
 0xbc3   :  { %3117 = vmatpush3.msra.mxu1 %v1723_v40  ;;  %v2122_v40 = vld [vmem:[%s4635_s19 + $0x68] sm:$0xff] }
 0xbc4   :  { %3118 = vmatprep.subr.mxu1 %v3935_v11 }
 0xbc5   :  { %3119 = vmatpush3.msra.mxu1 %v1722_v41  ;;  %v2124_v41 = vld [vmem:[%s4635_s19 + $0x78] sm:$0xff] }
 0xbc6   :  { %3120 = vmatprep.subr.mxu1 %v3935_v11 }
 0xbc7   :  { %3121 = vmatpush3.msra.mxu1 %v1721_v44  ;;  %v2118_v44 = vld [vmem:[%s4635_s19 + $0x48] sm:$0xff] }
 0xbc8   :  { %3122 = vmatprep.subr.mxu1 %v3935_v11 }
 0xbc9   :  { %3123 = vmatpush3.msra.mxu1 %v1720_v48  ;;  %v2116_v48 = vld [vmem:[%s4635_s19 + $0x38] sm:$0xff] }
 0xbca   :  { %3124 = vmatprep.subr.mxu1 %v3935_v11 }
 0xbcb   :  { %3125 = vmatpush3.msra.mxu1 %v1719_v49  ;;  %v2113_v49 = vld [vmem:[%s4635_s19 + $0x20] sm:$0xff] }
 0xbcc   :  { %3126 = vmatprep.subr.mxu1 %v3935_v11 }
 0xbcd   :  { %3127 = vmatpush3.msra.mxu1 %v1718_v50  ;;  %v2115_v50 = vld [vmem:[%s4635_s19 + $0x30] sm:$0xff] }
 0xbce   :  { %3153 = vmatprep.subr.mxu1 %v3935_v11 }
 0xc7e   :  { %v1559_v63 = vpop.f32.mrf.mxu1 }
 0xc7f   :  { %1564 = vrot.lane.b32.xlu0 %v1559_v63, %s3936_s28  ;;  %v1893_v63 = vld [vmem:[#allocation31 + $0x18] sm:$0xff] }
 0xc80   :  { %v3100_v1 = vpop.f32.mrf.mxu1 }
 0xc83   :  { %1580 = vrot.lane.b32.xlu0 %v4200_v0, %s3942_s1 }
 0xcf1   :  { %v1565_v2 = vpop.permute.xlu0 %1564 }
 0xcf2   :  { %v1567_v4 = vadd.f32 %v1565_v2, %v1384_v53  ;;  %v1807_v53 = vld [vmem:[#allocation28 + $0x8] sm:$0xff]  ;;  %v1892_v2 = vld [vmem:[#allocation31 + $0x10] sm:$0xff] }
 0xcf4   :  { %v1577_v5 = vadd.f32 %v1575_v3, %v1567_v4  ;;  %v1891_v3 = vld [vmem:[#allocation31 + $0x8] sm:$0xff]  ;;  %v1890_v4 = vld [vmem:[#allocation31] sm:$0xff] }
 0xcf5   :  { %v1581_v13 = vpop.permute.xlu0 %1580 }
 0xcf6   :  { %3326 = vtanh.f32 %v1577_v5  ;;  %v1991_v5 = vld [vmem:[#allocation32 + $0x18] sm:$0xff] }
 0xcf7   :  { %3328 = vpow2.f32 %v2806_v8  ;;  %v1988_v8 = vld [vmem:[#allocation32] sm:$0xff] }
 0xd03   :  { %v3327_v6 = vpop.eup %3326 }
 0xd04   :  { %1585 = vrot.lane.b32.xlu1 %v3327_v6, %s3945_s3  ;;  %v3329_v9 = vpop.eup %3328  ;;  %v1990_v6 = vld [vmem:[#allocation32 + $0x10] sm:$0xff] }
 0xd05   :  { %v1482_v10 = vadd.f32 1.0, %v3329_v9 }
 0xd07   :  { %3330 = vrcp.f32 %v1482_v10 }
 0xd14   :  { %v3331_v12 = vpop.eup %3330 }
 0xd15   :  { %v1579_v14 = vsub.f32 1.0, %v3331_v12 }
 0xd17   :  { %v1583_v16 = vmul.f32 %v1581_v13, %v1579_v14  ;;  %v2817_v13 = vld [vmem:[%s4633_s15] ss:$0 sm:$0xff] }
 0xd76   :  { %v1586_v15 = vpop.permute.xlu1 %1585 }
 0xd77   :  { %v1588_v0 = vmul.f32 %v3331_v12, %v1586_v15  ;;  %v2815_v12 = vld [vmem:[#allocation29] ss:$0 sm:$0xff] }
 0xd79   :  { %v4422_v17 = vadd.f32 %v1588_v0, %v1583_v16 }
 0xd7b   :  { %1591 = vrot.lane.b32.xlu0 %v4422_v17, %s3945_s3 }
 0xded   :  { %v4426_v36 = vpop.permute.xlu0 %1591 }
 0xdee   :  { %v1594_v18 = vsel %vm433_vm0, %v4426_v36, 0.0 }
 0xdef   :  { %1595 = vadd.xlane.f32.xlu1 %v1594_v18 }
 0xe00   :  { %1617 = vrot.lane.b32.xlu1 %v2809_v19, %s3942_s1 }
 0xe78   :  { %v1596_v38 = vpop.xlane.xlu1 %1595 }
 0xe79   :  { %v1597_v20 = vmul.f32 0.03125, %v1596_v38 }
 0xe7b   :  { %v1598_v21 = vsub.f32 %v4422_v17, %v1597_v20 }
 0xe7c   :  { %v1618_v43 = vpop.permute.xlu1 %1617 }
 0xe7d   :  { %v1599_v22 = vmul.f32 %v1598_v21, %v1598_v21 }
 0xe7f   :  { %1601 = vrot.lane.b32.xlu0 %v1599_v22, %s3945_s3 }
 0xef1   :  { %v1602_v24 = vpop.permute.xlu0 %1601 }
 0xef2   :  { %v1604_v25 = vsel %vm433_vm0, %v1602_v24, 0.0  ;;  %v2823_v24 = vld [vmem:[%s4634_s5] ss:$0 sm:$0xff] }
 0xef3   :  { %1605 = vadd.xlane.f32.xlu0 %v1604_v25 }
 0xf09   :  { %1627 = vrot.lane.b32.xlu0 %v2810_v26, %s3942_s1 }
 0xf0d   :  { %2076 = vrot.lane.b32.xlu0 %v2823_v24, %s3936_s28  ;;  %v2357_v24 = vld [vmem:[#allocation35 + $0x1d8] sm:$0xff] }
 0xf7c   :  { %v1606_v31 = vpop.xlane.xlu0 %1605 }
 0xf7d   :  { %v1607_v32 = vmul.f32 0.03125, %v1606_v31 }
 0xf7f   :  { %v1608_v33 = vadd.f32 1e-05, %v1607_v32 }
 0xf80   :  { %v1628_v45 = vpop.permute.xlu0 %1627 }
 0xf81   :  { %3332 = vrsqrt.f32 %v1608_v33 }
 0xf84   :  { %v2077_v28 = vpop.permute.xlu0 %2076 }
 0xf8e   :  { %v3333_v42 = vpop.eup %3332 }
 0xf8f   :  { %v1610_v37 = vmul.f32 %v3333_v42, %v1598_v21  ;;  %v2121_v42 = vld [vmem:[%s4635_s19 + $0x60] sm:$0xff] }
 0xf91   :  { %v1620_v46 = vmul.f32 %v1618_v43, %v1610_v37  ;;  %v2123_v43 = vld [vmem:[%s4635_s19 + $0x70] sm:$0xff]  ;;  %v2120_v37 = vld [vmem:[%s4635_s19 + $0x58] sm:$0xff] }
 0xf93   :  { %v1630_v34 = vadd.f32 %v1628_v45, %v1620_v46  ;;  %v2117_v45 = vld [vmem:[%s4635_s19 + $0x40] sm:$0xff]  ;;  %v2119_v46 = vld [vmem:[%s4635_s19 + $0x50] sm:$0xff] }
 0xf95   :  { %1643 = vrot.lane.b32.xlu1 %v1630_v34, %s3945_s3  ;;  %v2114_v34 = vld [vmem:[%s4635_s19 + $0x28] sm:$0xff] }
0x1007   :  { %v1644_v47 = vpop.permute.xlu1 %1643 }
0x1008   :  { %3110 = vmatmul.mubr.msk.f32.vlgmr.msra.gmra.mxu0 %vm433_vm0, %v1644_v47 }
0x1009   :  { %3139 = vmatprep.mubr.msk.f32.mxu0 %vm3937_vm2, %v3935_v11  ;;  %3132 = vmatpush3.msra.mxu0 %v1809_v51  ;;  %v2110_v51 = vld [vmem:[%s4635_s19 + $0x8] sm:$0xff] }
0x100a   :  { %3133 = vmatprep.subr.mxu0 %v3935_v11 }
0x100b   :  { %3134 = vmatpush3.msra.mxu0 %v1808_v52  ;;  %v2112_v52 = vld [vmem:[%s4635_s19 + $0x18] sm:$0xff] }
0x100c   :  { %3135 = vmatprep.subr.mxu0 %v3935_v11 }
0x100d   :  { %3136 = vmatpush3.msra.mxu0 %v1807_v53  ;;  %v2109_v53 = vld [vmem:[%s4635_s19] sm:$0xff] }
0x100e   :  { %3137 = vmatprep.subr.mxu0 %v3935_v11 }
0x100f   :  { %3138 = vmatpush3.msra.mxu0 %v1806_v59 }
0x1010   :  { %3142 = vmatprep.subr.mxu0 %v3935_v11 }
0x10c8   :  { %v1713_v55 = vpop.f32.mrf.mxu0 }
0x10c9   :  { %v1714_v56 = vadd.f32 %v2811_v54, %v1713_v55  ;;  %v2111_v54 = vld [vmem:[%s4635_s19 + $0x10] sm:$0xff] }
0x10ca   :  { %v3111_v57 = vpop.f32.mrf.mxu0 }
0x10cb   :  { %v1717_v58 = vmax.f32 %v1714_v56, 0.0 }
0x10cd   :  { %3129 = vmatmul.mubr.msk.f32.vlgmr.msra.gmra.mxu1 %vm1229_vm11, %v1717_v58 }
0x10ce   :  { %3161 = vmatprep.mubr.msk.f32.mxu1 %vm3937_vm2, %v3935_v11  ;;  %3154 = vmatpush3.msra.mxu1 %v1991_v5 }
0x10cf   :  { %3155 = vmatprep.subr.mxu1 %v3935_v11 }
0x10d0   :  { %3156 = vmatpush3.msra.mxu1 %v1990_v6 }
0x10d1   :  { %3157 = vmatprep.subr.mxu1 %v3935_v11 }
0x10d2   :  { %3158 = vmatpush3.msra.mxu1 %v1989_v7  ;;  %v2313_v7 = vld [vmem:[#allocation35 + $0x78] sm:$0xff] }
0x10d3   :  { %3159 = vmatprep.subr.mxu1 %v3935_v11 }
0x10d4   :  { %3160 = vmatpush3.msra.mxu1 %v1988_v8  ;;  %v2345_v8 = vld [vmem:[#allocation35 + $0x178] sm:$0xff] }
0x10d5   :  { %2247 = vmatprep.subr.mxu1 %v2124_v41  ;;  %v2338_v41 = vld [vmem:[#allocation35 + $0x140] sm:$0xff] }
0x118d   :  { %v1802_v61 = vpop.f32.mrf.mxu1 }
0x118e   :  { %v1803_v62 = vadd.f32 %v2813_v60, %v1802_v61 }
0x118f   :  { %v3130_v1 = vpop.f32.mrf.mxu1 }
0x1190   :  { %3140 = vmatmul.mubr.msk.f32.vlgmr.msra.gmra.mxu0 %vm433_vm0, %v1803_v62  ;;  %v2329_v62 = vld [vmem:[#allocation35 + $0xf8] sm:$0xff] }
0x1191   :  { %3143 = vmatpush3.msra.mxu0 %v1893_v63  ;;  %3150 = vmatprep.mubr.msk.f32.mxu0 %vm3937_vm2, %v3935_v11  ;;  %v2361_v63 = vld [vmem:[#allocation35 + $0x1f8] sm:$0xff] }
0x1192   :  { %3144 = vmatprep.subr.mxu0 %v3935_v11 }
0x1193   :  { %3145 = vmatpush3.msra.mxu0 %v1892_v2 }
0x1194   :  { %3146 = vmatprep.subr.mxu0 %v3935_v11 }
0x1195   :  { %3147 = vmatpush3.msra.mxu0 %v1891_v3 }
0x1196   :  { %3148 = vmatprep.subr.mxu0 %v3935_v11 }
0x1197   :  { %3149 = vmatpush3.msra.mxu0 %v1890_v4 }
0x1198   :  { %3151 = vmatmul.mubr.msk.f32.vlgmr.msra.gmra.mxu0 %vm433_vm0, %v4426_v36  ;;  %2176 = vmatprep.subr.mxu0 %v2122_v40  ;;  %v2306_v40 = vld [vmem:[#allocation35 + $0x40] sm:$0xff] }
0x1199   :  { %2216 = vmatprep.mubr.f32.mxu0 %v3935_v11  ;;  %2177 = vmatpush1.msra.mxu0 %v2121_v42  ;;  %v2321_v42 = vld [vmem:[#allocation35 + $0xb8] sm:$0xff] }
0x119a   :  { %2178 = vmatprep.subr.mxu0 %v2118_v44  ;;  %v2305_v44 = vld [vmem:[#allocation35 + $0x38] sm:$0xff] }
0x119b   :  { %2179 = vmatpush1.msra.mxu0 %v2117_v45  ;;  %v2320_v45 = vld [vmem:[#allocation35 + $0xb0] sm:$0xff] }
0x119c   :  { %2180 = vmatprep.subr.mxu0 %v2114_v34  ;;  %v2304_v34 = vld [vmem:[#allocation35 + $0x30] sm:$0xff] }
0x119d   :  { %2181 = vmatpush1.msra.mxu0 %v2113_v49  ;;  %v2351_v49 = vld [vmem:[#allocation35 + $0x1a8] sm:$0xff] }
0x119e   :  { %2182 = vmatprep.subr.mxu0 %v2110_v51  ;;  %v2335_v51 = vld [vmem:[#allocation35 + $0x128] sm:$0xff] }
0x119f   :  { %2183 = vmatpush1.msra.mxu0 %v2109_v53  ;;  %v2350_v53 = vld [vmem:[#allocation35 + $0x1a0] sm:$0xff] }
0x11a0   :  { %2899 = vmatprep.subr.mxu0 %v2329_v62  ;;  %v2300_v62 = vld [vmem:[#allocation35 + $0x10] sm:$0xff] }
0x1250   :  { %v1886_v9 = vpop.f32.mrf.mxu0 }
0x1251   :  { %v1887_v15 = vadd.f32 %v2815_v12, %v1886_v9  ;;  %v2360_v12 = vld [vmem:[#allocation35 + $0x1f0] sm:$0xff] }
0x1252   :  { %v3141_v10 = vpop.f32.mrf.mxu0 }
0x1253   :  { %v2328_v10 = vld [vmem:[#allocation35 + $0xf0] sm:$0xff] }
0x1258   :  { %v1969_v14 = vpop.f32.mrf.mxu0 }
0x1259   :  { %v1970_v16 = vadd.f32 %v2817_v13, %v1969_v14  ;;  %v2312_v13 = vld [vmem:[#allocation35 + $0x70] sm:$0xff] }
0x125a   :  { %v3152_v0 = vpop.f32.mrf.mxu0  ;;  %v2344_v14 = vld [vmem:[#allocation35 + $0x170] sm:$0xff] }
0x125b   :  { %v1973_v18 = vadd.f32 %v1970_v16, %v1887_v15  ;;  %v2359_v16 = vld [vmem:[#allocation35 + $0x1e8] sm:$0xff] }
0x125c   :  { %v2311_v0 = vld [vmem:[#allocation35 + $0x68] sm:$0xff] }
0x125d   :  { %v2819_v19 = vmul.f32 -1.442695, %v1973_v18  ;;  %v2820_v31 = vadd.f32 -0.1, %v1973_v18  ;;  %v2343_v18 = vld [vmem:[#allocation35 + $0x168] sm:$0xff] }
0x125f   :  { %3334 = vpow2.f32 %v2819_v19  ;;  %v2821_v32 = vmul.f32 -1.442695, %v2820_v31  ;;  %v2326_v19 = vld [vmem:[#allocation35 + $0xe0] sm:$0xff]  ;;  %v2355_v31 = vld [vmem:[#allocation35 + $0x1c8] sm:$0xff] }
0x126c   :  { %v3335_v38 = vpop.eup %3334 }
0x126d   :  { %v1977_v20 = vadd.f32 1.0, %v3335_v38  ;;  %v2358_v38 = vld [vmem:[#allocation35 + $0x1e0] sm:$0xff] }
0x126f   :  { %3336 = vrcp.f32 %v1977_v20  ;;  %v2310_v20 = vld [vmem:[#allocation35 + $0x60] sm:$0xff] }
0x127c   :  { %v3337_v21 = vpop.eup %3336 }
0x127d   :  { %v1987_v22 = vmul.f32 %v3337_v21, %v4426_v36  ;;  %v2342_v21 = vld [vmem:[#allocation35 + $0x160] sm:$0xff] }
0x127f   :  { %3162 = vmatmul.mubr.msk.f32.vlgmr.msra.gmra.mxu1 %vm433_vm0, %v1987_v22  ;;  %v2325_v22 = vld [vmem:[#allocation35 + $0xd8] sm:$0xff] }
0x1280   :  { %2287 = vmatprep.mubr.f32.mxu1 %v3935_v11  ;;  %2248 = vmatpush1.msra.mxu1 %v2123_v43  ;;  %v2353_v43 = vld [vmem:[#allocation35 + $0x1b8] sm:$0xff] }
0x1281   :  { %2249 = vmatprep.subr.mxu1 %v2120_v37  ;;  %v2337_v37 = vld [vmem:[#allocation35 + $0x138] sm:$0xff] }
0x1282   :  { %2250 = vmatpush1.msra.mxu1 %v2119_v46  ;;  %v2352_v46 = vld [vmem:[#allocation35 + $0x1b0] sm:$0xff] }
0x1283   :  { %2251 = vmatprep.subr.mxu1 %v2116_v48  ;;  %v2319_v48 = vld [vmem:[#allocation35 + $0xa8] sm:$0xff] }
0x1284   :  { %2252 = vmatpush1.msra.mxu1 %v2115_v50  ;;  %v2303_v50 = vld [vmem:[#allocation35 + $0x28] sm:$0xff] }
0x1285   :  { %2253 = vmatprep.subr.mxu1 %v2112_v52  ;;  %v2318_v52 = vld [vmem:[#allocation35 + $0xa0] sm:$0xff] }
0x1286   :  { %2254 = vmatpush1.msra.mxu1 %v2111_v54  ;;  %v2302_v54 = vld [vmem:[#allocation35 + $0x20] sm:$0xff] }
0x1287   :  { %2934 = vmatprep.subr.mxu1 %v2361_v63  ;;  %v2332_v63 = vld [vmem:[#allocation35 + $0x110] sm:$0xff] }
0x133f   :  { %v2061_v25 = vpop.f32.mrf.mxu1 }
0x1340   :  { %2066 = vrot.lane.b32.xlu1 %v2061_v25, %s3936_s28  ;;  %v2309_v25 = vld [vmem:[#allocation35 + $0x58] sm:$0xff] }
0x1341   :  { %v3163_v26 = vpop.f32.mrf.mxu1 }
0x1342   :  { %v2341_v26 = vld [vmem:[#allocation35 + $0x158] sm:$0xff] }
0x13b2   :  { %v2067_v27 = vpop.permute.xlu1 %2066 }
0x13b3   :  { %v2069_v29 = vadd.f32 %v2067_v27, %v1887_v15  ;;  %v2327_v15 = vld [vmem:[#allocation35 + $0xe8] sm:$0xff]  ;;  %v2324_v27 = vld [vmem:[#allocation35 + $0xd0] sm:$0xff] }
0x13b5   :  { %v2079_v30 = vadd.f32 %v2077_v28, %v2069_v29  ;;  %v2356_v28 = vld [vmem:[#allocation35 + $0x1d0] sm:$0xff] }
0x13b6   :  { %v2308_v29 = vld [vmem:[#allocation35 + $0x50] sm:$0xff] }
0x13b7   :  { %3338 = vtanh.f32 %v2079_v30  ;;  %v2340_v30 = vld [vmem:[#allocation35 + $0x150] sm:$0xff] }
0x13b8   :  { %3340 = vpow2.f32 %v2821_v32  ;;  %v2307_v32 = vld [vmem:[#allocation35 + $0x48] sm:$0xff] }
0x13c4   :  { %v3339_v36 = vpop.eup %3338 }
0x13c5   :  { %2084 = vrot.lane.b32.xlu1 %v3339_v36, %s3945_s3  ;;  %v3341_v33 = vpop.eup %3340  ;;  %v2323_v36 = vld [vmem:[#allocation35 + $0xc8] sm:$0xff] }
0x13c6   :  { %v1984_v35 = vadd.f32 1.0, %v3341_v33  ;;  %v2339_v33 = vld [vmem:[#allocation35 + $0x148] sm:$0xff] }
0x13c8   :  { %3342 = vrcp.f32 %v1984_v35  ;;  %v2322_v35 = vld [vmem:[#allocation35 + $0xc0] sm:$0xff] }
0x13d5   :  { %v3343_v39 = vpop.eup %3342 }
0x13d6   :  { %v2081_v47 = vsub.f32 1.0, %v3343_v39 }
0x13d8   :  { %v2082_v56 = vmul.f32 %v2081_v47, %v4422_v17  ;;  %v2336_v47 = vld [vmem:[#allocation35 + $0x130] sm:$0xff] }
0x1437   :  { %v2085_v55 = vpop.permute.xlu1 %2084 }
0x1438   :  { %v2087_v57 = vmul.f32 %v3343_v39, %v2085_v55  ;;  %v2354_v39 = vld [vmem:[#allocation35 + $0x1c0] sm:$0xff] }
0x1439   :  { %v2334_v55 = vld [vmem:[#allocation35 + $0x120] sm:$0xff] }
0x143a   :  { %v2088_v58 = vadd.f32 %v2087_v57, %v2082_v56  ;;  %v2317_v56 = vld [vmem:[#allocation35 + $0x98] sm:$0xff] }
0x143b   :  { %v2349_v57 = vld [vmem:[#allocation35 + $0x198] sm:$0xff] }
0x143c   :  { %v2100_v59 = vsel %vm2099_vm12, %v2088_v58, 0.0  ;;  %v2094_v60 = vrot.slane %v2088_v58, 2  ;;  %v2301_v58 = vld [vmem:[#allocation35 + $0x18] sm:$0xff] }
0x143d   :  { %v2101_v61 = vrot.slane %v2100_v59, 4 }
0x143e   :  { %2095 = vrot.lane.b32.xlu1 %v2094_v60, %s3945_s3  ;;  %v2316_v60 = vld [vmem:[#allocation35 + $0x90] sm:$0xff] }
0x143f   :  { %v2102_v1 = vadd.f32 %v2101_v61, %v2100_v59  ;;  %v2333_v59 = vld [vmem:[#allocation35 + $0x118] sm:$0xff]  ;;  %v2348_v61 = vld [vmem:[#allocation35 + $0x190] sm:$0xff] }
0x1441   :  { %v2103_v2 = vrot.slane %v2102_v1, 2 }
0x1443   :  { %v2104_v3 = vadd.f32 %v2103_v2, %v2102_v1  ;;  %v2315_v1 = vld [vmem:[#allocation35 + $0x88] sm:$0xff] }
0x1444   :  { %v2347_v2 = vld [vmem:[#allocation35 + $0x188] sm:$0xff] }
0x1445   :  { %v2105_v17 = vrot.slane %v2104_v3, 1 }
0x1447   :  { %v2106_v4 = vadd.f32 %v2105_v17, %v2104_v3  ;;  %v2299_v3 = vld [vmem:[#allocation35 + $0x8] sm:$0xff] }
0x1448   :  { %v2331_v17 = vld [vmem:[#allocation35 + $0x108] sm:$0xff] }
0x1449   :  { %v2108_v5 = vmul.f32 0.125, %v2106_v4  ;;  %v2314_v4 = vld [vmem:[#allocation35 + $0x80] sm:$0xff] }
0x144b   :  { %2127 = vrot.lane.b32.xlu0 %v2108_v5, %s3945_s3  ;;  %v2346_v5 = vld [vmem:[#allocation35 + $0x180] sm:$0xff] }
0x14b0   :  { %v2096_v6 = vpop.permute.xlu1 %2095 }
0x14b1   :  { %2098 = vst.msk [vmem:[#allocation40] sm:$0x3f] %vm2091_vm13, %v2096_v6  ;;  %v2298_v6 = vld [vmem:[#allocation35] sm:$0xff] }
0x14bd   :  { %v2128_v9 = vpop.permute.xlu0 %2127 }
0x14be   :  { %2824 = vmatmul.mubr.msk.f32.vlgmr.msra.gmra.mxu0 %vm433_vm0, %v2128_v9  ;;  %2825 = vmatmul.mubr.msk.f32.vlgmr.msra.gmra.mxu1 %vm433_vm0, %v2128_v9  ;;  %v2140_v9 = vsub.s32 2, %v4307_v23 }
0x14bf   :  { %2900 = vmatpush3.msra.mxu0 %v2313_v7  ;;  %2935 = vmatpush3.msra.mxu1 %v2345_v8  ;;  %v2330_v7 = vld [vmem:[#allocation35 + $0x100] sm:$0xff]  ;;  %v2132_v8 = vsub.s32 0, %v4307_v23 }
0x14c0   :  { %2901 = vmatprep.subr.mxu0 %v2328_v10  ;;  %2936 = vmatprep.subr.mxu1 %v2360_v12  ;;  %v2125_v10 = vld [vmem:[%s4636_s13] sm:$0xf]  ;;  %v2136_v12 = vsub.s32 1, %v4307_v23 }
0x14c1   :  { %2902 = vmatpush3.msra.mxu0 %v2312_v13  ;;  %2937 = vmatpush3.msra.mxu1 %v2344_v14  ;;  %v2144_v13 = vsub.s32 3, %v4307_v23  ;;  %v2133_v14 = vrot.slane %v2125_v10, %v2132_v8  ;;  %v2520_v8 = vld [vmem:[%s4640_s18] sm:$0x1] }
0x14c2   :  { %2903 = vmatprep.subr.mxu0 %v2327_v15  ;;  %2938 = vmatprep.subr.mxu1 %v2359_v16  ;;  %v2141_v15 = vrot.slane %v2125_v10, %v2140_v9  ;;  %v2137_v16 = vrot.slane %v2125_v10, %v2136_v12 }
0x14c3   :  { %2904 = vmatpush3.msra.mxu0 %v2311_v0  ;;  %2939 = vmatpush3.msra.mxu1 %v2343_v18  ;;  %v2145_v0 = vrot.slane %v2125_v10, %v2144_v13 }
0x14c4   :  { %2905 = vmatprep.subr.mxu0 %v2326_v19  ;;  %2940 = vmatprep.subr.mxu1 %v2358_v38 }
0x14c5   :  { %2906 = vmatpush3.msra.mxu0 %v2310_v20  ;;  %2941 = vmatpush3.msra.mxu1 %v2342_v21 }
0x14c6   :  { %2907 = vmatprep.subr.mxu0 %v2325_v22  ;;  %2942 = vmatprep.subr.mxu1 %v2357_v24 }
0x14c7   :  { %2908 = vmatpush3.msra.mxu0 %v2309_v25  ;;  %2943 = vmatpush3.msra.mxu1 %v2341_v26 }
0x14c8   :  { %2909 = vmatprep.subr.mxu0 %v2324_v27  ;;  %2944 = vmatprep.subr.mxu1 %v2356_v28 }
0x14c9   :  { %2910 = vmatpush3.msra.mxu0 %v2308_v29  ;;  %2945 = vmatpush3.msra.mxu1 %v2340_v30  ;;  %v2519_v29 = vld [vmem:[%s4637_s16 + $0x78] sm:$0xff]  ;;  %v2518_v30 = vld [vmem:[%s4637_s16 + $0x70] sm:$0xff] }
0x14ca   :  { %2911 = vmatprep.subr.mxu0 %v2323_v36  ;;  %2946 = vmatprep.subr.mxu1 %v2355_v31  ;;  %v2517_v36 = vld [vmem:[%s4637_s16 + $0x68] sm:$0xff]  ;;  %v2516_v31 = vld [vmem:[%s4637_s16 + $0x60] sm:$0xff] }
0x14cb   :  { %2912 = vmatpush3.msra.mxu0 %v2307_v32  ;;  %2947 = vmatpush3.msra.mxu1 %v2339_v33  ;;  %v2515_v32 = vld [vmem:[%s4637_s16 + $0x58] sm:$0xff]  ;;  %v2514_v33 = vld [vmem:[%s4637_s16 + $0x50] sm:$0xff] }
0x14cc   :  { %2913 = vmatprep.subr.mxu0 %v2322_v35  ;;  %2948 = vmatprep.subr.mxu1 %v2354_v39  ;;  %v2513_v35 = vld [vmem:[%s4637_s16 + $0x48] sm:$0xff]  ;;  %v2512_v39 = vld [vmem:[%s4637_s16 + $0x40] sm:$0xff] }
0x14cd   :  { %2914 = vmatpush3.msra.mxu0 %v2306_v40  ;;  %2949 = vmatpush3.msra.mxu1 %v2338_v41  ;;  %v2511_v40 = vld [vmem:[%s4637_s16 + $0x38] sm:$0xff]  ;;  %v2510_v41 = vld [vmem:[%s4637_s16 + $0x30] sm:$0xff] }
0x14ce   :  { %2915 = vmatprep.subr.mxu0 %v2321_v42  ;;  %2950 = vmatprep.subr.mxu1 %v2353_v43  ;;  %v2509_v42 = vld [vmem:[%s4637_s16 + $0x28] sm:$0xff]  ;;  %v2508_v43 = vld [vmem:[%s4637_s16 + $0x20] sm:$0xff] }
0x14cf   :  { %2916 = vmatpush3.msra.mxu0 %v2305_v44  ;;  %2951 = vmatpush3.msra.mxu1 %v2337_v37  ;;  %v2507_v44 = vld [vmem:[%s4637_s16 + $0x18] sm:$0xff]  ;;  %v2506_v37 = vld [vmem:[%s4637_s16 + $0x10] sm:$0xff] }
0x14d0   :  { %2917 = vmatprep.subr.mxu0 %v2320_v45  ;;  %2952 = vmatprep.subr.mxu1 %v2352_v46  ;;  %v2505_v45 = vld [vmem:[%s4637_s16 + $0x8] sm:$0xff]  ;;  %v2504_v46 = vld [vmem:[%s4637_s16] sm:$0xff] }
0x14d1   :  { %2918 = vmatpush3.msra.mxu0 %v2304_v34  ;;  %2953 = vmatpush3.msra.mxu1 %v2336_v47  ;;  %v2607_v34 = vld [vmem:[%s4638_s6 + $0x78] sm:$0xff]  ;;  %v2606_v47 = vld [vmem:[%s4638_s6 + $0x70] sm:$0xff] }
0x14d2   :  { %2919 = vmatprep.subr.mxu0 %v2319_v48  ;;  %2954 = vmatprep.subr.mxu1 %v2351_v49  ;;  %v2605_v48 = vld [vmem:[%s4638_s6 + $0x68] sm:$0xff]  ;;  %v2604_v49 = vld [vmem:[%s4638_s6 + $0x60] sm:$0xff] }
0x14d3   :  { %2920 = vmatpush3.msra.mxu0 %v2303_v50  ;;  %2955 = vmatpush3.msra.mxu1 %v2335_v51  ;;  %v2603_v50 = vld [vmem:[%s4638_s6 + $0x58] sm:$0xff]  ;;  %v2602_v51 = vld [vmem:[%s4638_s6 + $0x50] sm:$0xff] }
0x14d4   :  { %2921 = vmatprep.subr.mxu0 %v2318_v52  ;;  %2956 = vmatprep.subr.mxu1 %v2350_v53  ;;  %v2601_v52 = vld [vmem:[%s4638_s6 + $0x48] sm:$0xff]  ;;  %v2600_v53 = vld [vmem:[%s4638_s6 + $0x40] sm:$0xff] }
0x14d5   :  { %2922 = vmatpush3.msra.mxu0 %v2302_v54  ;;  %2957 = vmatpush3.msra.mxu1 %v2334_v55  ;;  %v2599_v54 = vld [vmem:[%s4638_s6 + $0x38] sm:$0xff]  ;;  %v2598_v55 = vld [vmem:[%s4638_s6 + $0x30] sm:$0xff] }
0x14d6   :  { %2923 = vmatprep.subr.mxu0 %v2317_v56  ;;  %2958 = vmatprep.subr.mxu1 %v2349_v57  ;;  %v2597_v56 = vld [vmem:[%s4638_s6 + $0x28] sm:$0xff]  ;;  %v2596_v57 = vld [vmem:[%s4638_s6 + $0x20] sm:$0xff] }
0x14d7   :  { %2924 = vmatpush3.msra.mxu0 %v2301_v58  ;;  %2959 = vmatpush3.msra.mxu1 %v2333_v59  ;;  %v2595_v58 = vld [vmem:[%s4638_s6 + $0x18] sm:$0xff] }
0x14d8   :  { %2925 = vmatprep.subr.mxu0 %v2316_v60  ;;  %2960 = vmatprep.subr.mxu1 %v2348_v61  ;;  %v2362_v61 = vld [vmem:[%s4639_s17] sm:$0x1] }
0x14d9   :  { %2926 = vmatpush3.msra.mxu0 %v2300_v62  ;;  %2961 = vmatpush3.msra.mxu1 %v2332_v63 }
0x14da   :  { %2927 = vmatprep.subr.mxu0 %v2315_v1  ;;  %2962 = vmatprep.subr.mxu1 %v2347_v2 }
0x14db   :  { %2928 = vmatpush3.msra.mxu0 %v2299_v3  ;;  %2963 = vmatpush3.msra.mxu1 %v2331_v17 }
0x14dc   :  { %2929 = vmatprep.subr.mxu0 %v2314_v4  ;;  %2964 = vmatprep.subr.mxu1 %v2346_v5  ;;  %v2594_v5 = vld [vmem:[%s4638_s6 + $0x10] sm:$0xff] }
0x14dd   :  { %2930 = vmatpush3.msra.mxu0 %v2298_v6  ;;  %2965 = vmatpush3.msra.mxu1 %v2330_v7  ;;  %v2593_v6 = vld [vmem:[%s4638_s6 + $0x8] sm:$0xff]  ;;  %v2592_v7 = vld [vmem:[%s4638_s6] sm:$0xff] }
0x14de   :  { %3164 = vmatprep.subr.mxu0 %v3935_v11  ;;  %3199 = vmatprep.subr.mxu1 %v3935_v11 }
0x157e   :  { %v2218_v18 = vpop.f32.mrf.mxu0  ;;  %v2289_v19 = vpop.f32.mrf.mxu1 }
0x157f   :  { %v2219_v38 = vadd.f32 %v2218_v18, %v2133_v14  ;;  %v2290_v20 = vadd.f32 %v2289_v19, %v2141_v15  ;;  %v3344_v14 = vld [vmem:[#allocation2] sm:$0xff] }
0x1580   :  { %v2220_v21 = vpop.f32.mrf.mxu0  ;;  %v2291_v22 = vpop.f32.mrf.mxu1  ;;  %v2089_v15 = vrot.slane %v3344_v14, 2 }
0x1581   :  { %v2221_v24 = vadd.f32 %v2220_v21, %v2137_v16  ;;  %v2292_v25 = vadd.f32 %v2291_v22, %v2145_v0  ;;  %v2294_v28 = vmax.f32 %v2219_v38, 0.0  ;;  %v2296_v23 = vmax.f32 %v2290_v20, 0.0 }
0x1582   :  { %2092 = vst.msk [vmem:[#allocation38] sm:$0x3f] %vm2091_vm13, %v2089_v15 }
0x1583   :  { %v2295_v26 = vmax.f32 %v2221_v24, 0.0  ;;  %v2297_v27 = vmax.f32 %v2292_v25, 0.0 }
0x1585   :  { %2427 = vmatprep.mubr.f32.mxu0 %v2295_v26  ;;  %2497 = vmatprep.mubr.f32.mxu1 %v2297_v27 }
0x1586   :  { %2428 = vmatmul.mubr.f32.vlgmr.msra.gmra.mxu0 %v2294_v28  ;;  %2498 = vmatmul.mubr.f32.vlgmr.msra.gmra.mxu1 %v2296_v23 }
0x1587   :  { %3165 = vmatpush3.msra.mxu0 %v2519_v29  ;;  %3196 = vmatprep.mubr.msk.f32.mxu0 %vm3937_vm2, %v3935_v11 }
0x1588   :  { %3166 = vmatprep.subr.mxu0 %v3935_v11  ;;  %3231 = vmatprep.mubr.msk.f32.mxu1 %vm3937_vm2, %v3935_v11 }
0x1589   :  { %3167 = vmatpush3.msra.mxu0 %v2518_v30  ;;  %3200 = vmatpush3.msra.mxu1 %v2607_v34 }
0x158a   :  { %3168 = vmatprep.subr.mxu0 %v3935_v11  ;;  %3201 = vmatprep.subr.mxu1 %v3935_v11 }
0x158b   :  { %3169 = vmatpush3.msra.mxu0 %v2517_v36  ;;  %3202 = vmatpush3.msra.mxu1 %v2606_v47 }
0x158c   :  { %3170 = vmatprep.subr.mxu0 %v3935_v11  ;;  %3203 = vmatprep.subr.mxu1 %v3935_v11 }
0x158d   :  { %3171 = vmatpush3.msra.mxu0 %v2516_v31  ;;  %3204 = vmatpush3.msra.mxu1 %v2605_v48 }
0x158e   :  { %3172 = vmatprep.subr.mxu0 %v3935_v11  ;;  %3205 = vmatprep.subr.mxu1 %v3935_v11 }
0x158f   :  { %3173 = vmatpush3.msra.mxu0 %v2515_v32  ;;  %3206 = vmatpush3.msra.mxu1 %v2604_v49 }
0x1590   :  { %3174 = vmatprep.subr.mxu0 %v3935_v11  ;;  %3207 = vmatprep.subr.mxu1 %v3935_v11 }
0x1591   :  { %3175 = vmatpush3.msra.mxu0 %v2514_v33  ;;  %3208 = vmatpush3.msra.mxu1 %v2603_v50 }
0x1592   :  { %3176 = vmatprep.subr.mxu0 %v3935_v11  ;;  %3209 = vmatprep.subr.mxu1 %v3935_v11 }
0x1593   :  { %3177 = vmatpush3.msra.mxu0 %v2513_v35  ;;  %3210 = vmatpush3.msra.mxu1 %v2602_v51 }
0x1594   :  { %3178 = vmatprep.subr.mxu0 %v3935_v11  ;;  %3211 = vmatprep.subr.mxu1 %v3935_v11 }
0x1595   :  { %3179 = vmatpush3.msra.mxu0 %v2512_v39  ;;  %3212 = vmatpush3.msra.mxu1 %v2601_v52 }
0x1596   :  { %3180 = vmatprep.subr.mxu0 %v3935_v11  ;;  %3213 = vmatprep.subr.mxu1 %v3935_v11 }
0x1597   :  { %3181 = vmatpush3.msra.mxu0 %v2511_v40  ;;  %3214 = vmatpush3.msra.mxu1 %v2600_v53 }
0x1598   :  { %3182 = vmatprep.subr.mxu0 %v3935_v11  ;;  %3215 = vmatprep.subr.mxu1 %v3935_v11 }
0x1599   :  { %3183 = vmatpush3.msra.mxu0 %v2510_v41  ;;  %3216 = vmatpush3.msra.mxu1 %v2599_v54 }
0x159a   :  { %3184 = vmatprep.subr.mxu0 %v3935_v11  ;;  %3217 = vmatprep.subr.mxu1 %v3935_v11 }
0x159b   :  { %3185 = vmatpush3.msra.mxu0 %v2509_v42  ;;  %3218 = vmatpush3.msra.mxu1 %v2598_v55 }
0x159c   :  { %3186 = vmatprep.subr.mxu0 %v3935_v11  ;;  %3219 = vmatprep.subr.mxu1 %v3935_v11 }
0x159d   :  { %3187 = vmatpush3.msra.mxu0 %v2508_v43  ;;  %3220 = vmatpush3.msra.mxu1 %v2597_v56 }
0x159e   :  { %3188 = vmatprep.subr.mxu0 %v3935_v11  ;;  %3221 = vmatprep.subr.mxu1 %v3935_v11 }
0x159f   :  { %3189 = vmatpush3.msra.mxu0 %v2507_v44  ;;  %3222 = vmatpush3.msra.mxu1 %v2596_v57 }
0x15a0   :  { %3190 = vmatprep.subr.mxu0 %v3935_v11  ;;  %3223 = vmatprep.subr.mxu1 %v3935_v11 }
0x15a1   :  { %3191 = vmatpush3.msra.mxu0 %v2506_v37  ;;  %3224 = vmatpush3.msra.mxu1 %v2595_v58 }
0x15a2   :  { %3192 = vmatprep.subr.mxu0 %v3935_v11  ;;  %3225 = vmatprep.subr.mxu1 %v3935_v11 }
0x15a3   :  { %3193 = vmatpush3.msra.mxu0 %v2505_v45  ;;  %3226 = vmatpush3.msra.mxu1 %v2594_v5 }
0x15a4   :  { %3194 = vmatprep.subr.mxu0 %v3935_v11  ;;  %3227 = vmatprep.subr.mxu1 %v3935_v11 }
0x15a5   :  { %3195 = vmatpush3.msra.mxu0 %v2504_v46  ;;  %3228 = vmatpush3.msra.mxu1 %v2593_v6 }
0x15a6   :  { %3229 = vmatprep.subr.mxu1 %v3935_v11 }
0x15a7   :  { %3230 = vmatpush3.msra.mxu1 %v2592_v7 }
0x1646   :  { %v2931_v59 = vpop.f32.mrf.mxu0  ;;  %v2966_v60 = vpop.f32.mrf.mxu1 }
0x1648   :  { %v2932_v62 = vpop.f32.mrf.mxu0  ;;  %v2967_v63 = vpop.f32.mrf.mxu1 }
0x1649   :  { %v2933_v1 = vadd.f32 %v2932_v62, %v2931_v59  ;;  %v2968_v3 = vadd.f32 %v2967_v63, %v2966_v60 }
0x164b   :  { %v2430_v2 = vadd.f32 %v2933_v1, %v2362_v61 }
0x164d   :  { %v2500_v17 = vadd.f32 %v2968_v3, %v2430_v2 }
0x164f   :  { %v2503_v4 = vmax.f32 %v2500_v17, 0.0 }
0x1651   :  { %3197 = vmatmul.mubr.f32.vlgmr.msra.gmra.mxu0 %v2503_v4 }
0x1711   :  { %v2587_v9 = vpop.f32.mrf.mxu0 }
0x1712   :  { %v2588_v10 = vadd.f32 %v2587_v9, %v2520_v8 }
0x1713   :  { %v3198_v12 = vpop.f32.mrf.mxu0 }
0x1714   :  { %v2591_v13 = vmax.f32 %v2588_v10, 0.0 }
0x1716   :  { %3232 = vmatmul.mubr.f32.vlgmr.msra.gmra.mxu1 %v2591_v13 }
0x1717   :  { %3796 = shalt.err (!%p3793_p2)
}
0x1718   :  { %2701 = dma.vmem_to_hbm [thread:$0]  %s2699_s21, 128, %s4144_s12, [#allocation39]  }
0x1719   :  { %s3949_s26 = smov [#allocation40]  }
0x171a   :  { %s2708_s28 = sshll.u32 %s3949_s26, 4  ;;  %s2709_s28 = int_to_ptr.vmem [resolvable:$true] %s2708_s28 }
0x171b   :  { %s3805_s29 = scalar_lea.vmem %s2709_s28, 128  ;;  %p3810_p4 = scmp.lt.s32.totalorder %s2709_s28, %s2709_s28 }
0x171c   :  { %p3806_p3 = scmp.ne.s32.totalorder %s2709_s28, %s3805_s29  ;;  %p3811_p5 = scmp.lt.s32.totalorder %s3805_s29, %s3805_s29 }
0x171e   :  { %p3812_p6 = por %p3811_p5, %p3810_p4 }
0x1720   :  { %p3813_p7 = pnand %p3812_p6, %p3806_p3 }
0x1722   :  { %3816 = shalt.err (!%p3813_p7)
}
0x1723   :  { %2711 = dma.vmem_to_hbm [thread:$0]  %s2709_s28, 128, %s4149_s14, [#allocation39]   ;;  %v2608_v11 = vld [vmem:[%s4134_s30] sm:$0x1]  ;;  %vm2680_vm14 = vcmask 57344  }
0x1724   :  { %s3950_s23 = smov [#allocation37]  }
0x1725   :  { %s2688_s20 = sshll.u32 %s3950_s23, 4  ;;  %s2689_s20 = int_to_ptr.vmem [resolvable:$true] %s2688_s20 }
0x1726   :  { %s3825_s12 = scalar_lea.vmem %s2689_s20, 16  ;;  %s3829_s4 = scalar_lea.vmem %s2689_s20, 32 }
0x1727   :  { %p3826_p8 = scmp.ne.s32.totalorder %s2689_s20, %s3825_s12  ;;  %p3830_p9 = scmp.lt.s32.totalorder %s2689_s20, %s2689_s20 }
0x1728   :  { %p3831_p10 = scmp.lt.s32.totalorder %s3829_s4, %s3825_s12 }
0x172a   :  { %p3832_p11 = por %p3831_p10, %p3830_p9 }
0x172c   :  { %p3833_p12 = pnand %p3832_p11, %p3826_p8 }
0x17d6   :  { %v2675_v16 = vpop.f32.mrf.mxu1 }
0x17d7   :  { %v2676_v0 = vadd.f32 %v2675_v16, %v2608_v11 }
0x17d8   :  { %v3233_v18 = vpop.f32.mrf.mxu1 }
0x17d9   :  { %v2679_v19 = vmax.f32 %v2676_v0, 0.0 }
0x17db   :  { %2681 = vst.msk [vmem:[#allocation37] sm:$0x1] %vm2680_vm14, %v2679_v19 }
0x17dc   :  { %3836 = shalt.err (!%p3833_p12)
}
0x17dd   :  { %2691 = dma.vmem_to_hbm [thread:$0]  %s2689_s20, 16, %s4139_s27, [#allocation4]  }
0x17de   :  { %3869 = dma.done.wait [#allocation4], 16  }
0x17df   :  { %3870 = vsyncadd [#allocation4], 4294967280 }
0x17e0   :  { %3871 = dma.done.wait [#allocation39], 256  }
0x17e1   :  { %3872 = vsyncadd [#allocation39], 4294967040 }
0x17e2   :  { %2721 = vsyncpa [#allocation3], 1 }
0x17e3   :  { %2722 = vsyncpa [#allocation6], 1 }
0x17e4   :  { %2723 = vsyncpa [#allocation9], 1 }
0x17e5   :  { %2724 = vsyncpa [#allocation12], 1 }
0x17e6   :  { %2725 = vsyncpa [#allocation15], 1 }
0x17e7   :  { %2726 = vsyncpa [#allocation18], 1 }
0x17e8   :  { %2727 = vsyncpa [#allocation21], 1 }
0x17e9   :  { %2728 = vsyncpa [#allocation24], 1 }
0x17ea   :  { %2729 = vsyncpa [#allocation27], 1 }
0x17eb   :  { %2730 = vsyncpa [#allocation30], 1 }
0x17ec   :  { %2731 = vsyncpa [#allocation33], 1 }
0x17ed   :  { %2732 = vsyncpa [#allocation36], 1 }
0x17ee   :  { %2733 = vsyncpa [#allocation4], 1 }
0x17ef   :  { %2734 = vsyncpa [#allocation39], 1 }

</bundles_post_ra>
